<compile_context>
chip_gen: v7x
topology: tpu7x:2x2x1
jax: 0.10.0
libtpu: 0.0.40
codegen_flags: <defaults>
</compile_context>

<pallas_src>
import functools

import jax
import jax.numpy as jnp
from jax.experimental import pallas as pl
from jax.experimental.pallas import tpu as pltpu


# ----------------------------------------------------------------------------
# Per-generation tiling policy
# ----------------------------------------------------------------------------

def _device_caps():
    """Return (TM_CAP, TN_CAP, TK_CAP, VMEM_LIMIT) by TPU generation.

    v7x has 64 MiB VMEM per TensorCore -> smaller blocks + tighter scoped
    budget; v5e/v6e have 128 MiB -> larger blocks amortize the ~0.35us/step
    grid overhead and push mem-bound steps toward the HBM roofline.
    """
    kind = ""
    try:
        kind = jax.devices()[0].device_kind.lower()
    except Exception:  # pragma: no cover - backend not initialized yet
        pass
    if "v7" in kind:
        return 256, 256, 512, 40 * 1024 * 1024
    return 512, 1024, 512, 96 * 1024 * 1024


TM_CAP, TN_CAP, TK_CAP, VMEM_LIMIT = _device_caps()

NEG_INF = -1e30


def _tile(dim, cap, granule):
    """Largest legal block size <= cap for a dim of size `dim`.

    Legal block dims: equal to the full dim (always legal), or a multiple of
    `granule` (16 sublanes for bf16 rows, 128 lanes) that divides `dim`.
    """
    if dim <= cap:
        return dim
    t = (cap // granule) * granule
    while t > granule and dim % t != 0:
        t -= granule
    return t if (t >= granule and dim % t == 0) else dim


def _cparams(*sem):
    return pltpu.CompilerParams(dimension_semantics=sem,
                                vmem_limit_bytes=VMEM_LIMIT)


# ----------------------------------------------------------------------------
# Pallas kernels
# ----------------------------------------------------------------------------

def _rmsnorm_kernel(x_ref, nw_ref, o_ref, *, eps):
    # LayerNormParameterized(use_mean=False, elementwise_scale=True,
    # elementwise_shift=False, use_high_precision_pow=True) == RMSNorm in f32.
    x = x_ref[...].astype(jnp.float32)
    ms = jnp.mean(x * x, axis=-1, keepdims=True)
    xn = (x * jax.lax.rsqrt(ms + eps)).astype(o_ref.dtype)
    o_ref[...] = xn * nw_ref[...].astype(o_ref.dtype)


def _norm_matmul_kernel(x_ref, w_ref, o_ref, xn_ref, *, eps):
    # Fused RMSNorm (f32 VPU/EUP) + matmul (bf16 MXU, f32 accumulate).
    # The norm scale vector is pre-folded into the rows of w, and the
    # normalized row tile is computed ONCE (at the first column tile) into a
    # VMEM scratch and reused across the N (j) axis.
    @pl.when(pl.program_id(1) == 0)
    def _():
        x = x_ref[...].astype(jnp.float32)
        ms = jnp.mean(x * x, axis=-1, keepdims=True)
        xn_ref[...] = (x * jax.lax.rsqrt(ms + eps)).astype(jnp.bfloat16)

    o_ref[...] = jnp.dot(xn_ref[...], w_ref[...],
                         preferred_element_type=jnp.float32).astype(o_ref.dtype)


def _norm_glu_kernel(x_ref, wg_ref, wu_ref, o_ref, xn_ref, *, eps):
    # Fused ff_ln RMSNorm + gate matmul + up matmul + SwiGLU epilogue.
    # ff_ln scale folded into wg/wu rows; norm computed once per row tile.
    @pl.when(pl.program_id(1) == 0)
    def _():
        x = x_ref[...].astype(jnp.float32)
        ms = jnp.mean(x * x, axis=-1, keepdims=True)
        xn_ref[...] = (x * jax.lax.rsqrt(ms + eps)).astype(jnp.bfloat16)

    xn = xn_ref[...]
    g = jnp.dot(xn, wg_ref[...], preferred_element_type=jnp.float32)
    u = jnp.dot(xn, wu_ref[...], preferred_element_type=jnp.float32)
    o_ref[...] = (g * jax.nn.sigmoid(g) * u).astype(o_ref.dtype)      # swish(g)*u


def _matmul_residual_kernel(x_ref, w_ref, r_ref, o_ref, acc_ref, *, res_mult):
    # K-accumulating matmul with fused `out = acc*res_mult + residual` epilogue.
    @pl.when(pl.program_id(2) == 0)
    def _():
        acc_ref[...] = jnp.zeros_like(acc_ref)

    acc_ref[...] += jnp.dot(x_ref[...], w_ref[...],
                            preferred_element_type=jnp.float32)

    @pl.when(pl.program_id(2) == pl.num_programs(2) - 1)
    def _():
        o_ref[...] = (acc_ref[...] * res_mult
                      + r_ref[...].astype(jnp.float32)).astype(o_ref.dtype)


def _attn_kernel(qkv_ref, cos_ref, sin_ref, o_ref, o_scr, *, nheads, kvheads,
                 head_dim, scale):
    # One batch per grid step.  Outer loop over kv heads (K rotary + casts done
    # once per kv head, reused by its `rep` query heads under GQA), inner loop
    # over that group's query heads.  Rotary: q/k weight columns were
    # de-interleaved at parameter-prep time, so the FMS interleaved
    # (complex-pair) rotation becomes rotate-half here:
    #   y = x * cos + swap_halves(x) * sin_signed   (sin_signed = [-s | s])
    # swap_halves is a static slice+concat (lane shuffle); at production
    # head_dim=128 this is a full-lane-width operation.
    # Per-head results are written into a [T, H*hd] f32 VMEM scratch via static
    # slices (only one head's [T,T] scores live at a time), then stored to the
    # output with a single lane-dense write in the layout wo expects.
    T = qkv_ref.shape[1]
    hd = head_dim
    half = hd // 2
    rep = nheads // kvheads

    qkv = qkv_ref[0]                                         # [T, (H+2KVH)*hd] bf16
    cos = cos_ref[...]                                       # [T, hd] f32
    sin = sin_ref[...]                                       # [T, hd] f32 (signed)

    row = jax.lax.broadcasted_iota(jnp.int32, (T, T), 0)
    col = jax.lax.broadcasted_iota(jnp.int32, (T, T), 1)
    causal = col <= row

    def rope(x):                                             # x: [T, hd] f32
        x_sw = jnp.concatenate([x[:, half:], x[:, :half]], axis=1)
        return x * cos + x_sw * sin

    for g in range(kvheads):
        k = rope(qkv[:, (nheads + g) * hd:(nheads + g + 1) * hd]
                 .astype(jnp.float32))
        kb = k.astype(jnp.bfloat16)
        v = qkv[:, (nheads + kvheads + g) * hd:
                   (nheads + kvheads + g + 1) * hd]          # stays bf16 for MXU

        for j in range(rep):
            h = g * rep + j
            q = rope(qkv[:, h * hd:(h + 1) * hd].astype(jnp.float32))
            qb = (q * scale).astype(jnp.bfloat16)            # fold scale into q

            # s = q @ k.T  (contract last dims; avoids an explicit transpose)
            s = jax.lax.dot_general(qb, kb, (((1,), (1,)), ((), ())),
                                    preferred_element_type=jnp.float32)
            s = jnp.where(causal, s, NEG_INF)

            m = jnp.max(s, axis=-1, keepdims=True)
            p = jnp.exp(s - m)
            denom = jnp.sum(p, axis=-1, keepdims=True)
            o = jnp.dot(p.astype(jnp.bfloat16), v,
                        preferred_element_type=jnp.float32)
            o_scr[:, h * hd:(h + 1) * hd] = o / denom        # exact softmax norm

    # Single lane-dense store in the [B, T, H*hd] layout the wo matmul wants.
    o_ref[0] = o_scr[...].astype(o_ref.dtype)


# ----------------------------------------------------------------------------
# Pallas wrappers
# ----------------------------------------------------------------------------

def rmsnorm(x, nw, eps):
    # x: [M, D] bf16, nw: [D] f32
    M, D = x.shape
    tm = _tile(M, TM_CAP, 16)
    return pl.pallas_call(
        functools.partial(_rmsnorm_kernel, eps=eps),
        out_shape=jax.ShapeDtypeStruct((M, D), x.dtype),
        grid=(M // tm,),
        in_specs=[pl.BlockSpec((tm, D), lambda i: (i, 0)),
                  pl.BlockSpec((1, D), lambda i: (0, 0))],
        out_specs=pl.BlockSpec((tm, D), lambda i: (i, 0)),
        compiler_params=_cparams("parallel"),
    )(x, nw.reshape(1, D))


def norm_matmul(x, w, eps):
    # out = rmsnorm(x) @ w      (norm scale pre-folded into w rows)
    M, D = x.shape
    N = w.shape[1]
    tm = _tile(M, TM_CAP, 16)
    tn = _tile(N, TN_CAP, 128)
    return pl.pallas_call(
        functools.partial(_norm_matmul_kernel, eps=eps),
        out_shape=jax.ShapeDtypeStruct((M, N), jnp.bfloat16),
        grid=(M // tm, N // tn),
        in_specs=[pl.BlockSpec((tm, D), lambda i, j: (i, 0)),
                  pl.BlockSpec((D, tn), lambda i, j: (0, j))],
        out_specs=pl.BlockSpec((tm, tn), lambda i, j: (i, j)),
        scratch_shapes=[pltpu.VMEM((tm, D), jnp.bfloat16)],
        # j axis must stay on one core (norm scratch is filled at j == 0).
        compiler_params=_cparams("parallel", "arbitrary"),
    )(x, w)


def norm_glu(x, wg, wu, eps):
    # out = swish(rmsnorm(x) @ wg) * (rmsnorm(x) @ wu)   (ff_ln folded into wg/wu)
    M, D = x.shape
    N = wg.shape[1]
    tm = _tile(M, TM_CAP, 16)
    tn = _tile(N, TN_CAP, 128)
    return pl.pallas_call(
        functools.partial(_norm_glu_kernel, eps=eps),
        out_shape=jax.ShapeDtypeStruct((M, N), jnp.bfloat16),
        grid=(M // tm, N // tn),
        in_specs=[pl.BlockSpec((tm, D), lambda i, j: (i, 0)),
                  pl.BlockSpec((D, tn), lambda i, j: (0, j)),
                  pl.BlockSpec((D, tn), lambda i, j: (0, j))],
        out_specs=pl.BlockSpec((tm, tn), lambda i, j: (i, j)),
        scratch_shapes=[pltpu.VMEM((tm, D), jnp.bfloat16)],
        compiler_params=_cparams("parallel", "arbitrary"),
    )(x, wg, wu)


def matmul_residual(x, w, res, res_mult):
    # out = (x @ w) * res_mult + res     x: [M, K], w: [K, N], res: [M, N]
    M, K = x.shape
    N = w.shape[1]
    tm = _tile(M, TM_CAP, 16)
    tn = _tile(N, TN_CAP, 128)
    tk = _tile(K, TK_CAP, 128)
    return pl.pallas_call(
        functools.partial(_matmul_residual_kernel, res_mult=res_mult),
        out_shape=jax.ShapeDtypeStruct((M, N), jnp.bfloat16),
        grid=(M // tm, N // tn, K // tk),
        in_specs=[pl.BlockSpec((tm, tk), lambda i, j, k: (i, k)),
                  pl.BlockSpec((tk, tn), lambda i, j, k: (k, j)),
                  pl.BlockSpec((tm, tn), lambda i, j, k: (i, j))],
        out_specs=pl.BlockSpec((tm, tn), lambda i, j, k: (i, j)),
        scratch_shapes=[pltpu.VMEM((tm, tn), jnp.float32)],
        compiler_params=_cparams("parallel", "parallel", "arbitrary"),
    )(x, w, res)


def causal_attention(qkv, cos, sin, *, nheads, kvheads, head_dim, scale):
    # qkv: [B, T, (H+2*KVH)*hd] bf16; cos/sin: [T, hd] f32 -> [B, T, H*hd] bf16
    # TODO(synk): dense [T,T] scores per head and grid=(B,) only; switch to an
    # online-softmax flash tiling over (B, q-tiles, kv-tiles) with m/l/acc
    # scratch once T grows toward max_expected_seq_len — at the toy T used here
    # dense is optimal and the whole batch fits in VMEM.
    B, T, NQKV = qkv.shape
    return pl.pallas_call(
        functools.partial(_attn_kernel, nheads=nheads, kvheads=kvheads,
                          head_dim=head_dim, scale=scale),
        out_shape=jax.ShapeDtypeStruct((B, T, nheads * head_dim), jnp.bfloat16),
        grid=(B,),
        in_specs=[pl.BlockSpec((1, T, NQKV), lambda b: (b, 0, 0)),
                  pl.BlockSpec((T, head_dim), lambda b: (0, 0)),
                  pl.BlockSpec((T, head_dim), lambda b: (0, 0))],
        out_specs=pl.BlockSpec((1, T, nheads * head_dim), lambda b: (b, 0, 0)),
        scratch_shapes=[pltpu.VMEM((T, nheads * head_dim), jnp.float32)],
        compiler_params=_cparams("parallel"),
    )(qkv, cos, sin)


# ----------------------------------------------------------------------------
# Rotary tables (rotate-half layout; q/k weight columns de-interleaved at init)
# ----------------------------------------------------------------------------

def rotary_tables(T, head_dim, theta):
    inv_freq = 1.0 / (theta ** (jnp.arange(0, head_dim, 2, dtype=jnp.float32)
                                / head_dim))
    ang = jnp.arange(T, dtype=jnp.float32)[:, None] * inv_freq[None, :]  # [T, hd//2]
    cos = jnp.concatenate([jnp.cos(ang), jnp.cos(ang)], axis=-1)         # [T, hd]
    sin = jnp.concatenate([-jnp.sin(ang), jnp.sin(ang)], axis=-1)        # signed
    return cos, sin


# ----------------------------------------------------------------------------
# Granite model (headless) in JAX, using the Pallas kernels above
# ----------------------------------------------------------------------------

def make_config():
    emb_dim = 64
    nheads = 4
    return dict(
        src_vocab_size=128,
        emb_dim=emb_dim,
        norm_eps=1e-5,
        nheads=nheads,
        kvheads=0,                 # 0 => kvheads = nheads (MHA, no GQA)
        nlayers=2,
        pad_id=-1,
        hidden_grow_factor=8 / 3,
        multiple_of=32,
        rope_theta=10000.0,
        embedding_multiplier=2.0,
        residual_multiplier=0.5,
        attention_multiplier=(emb_dim // nheads) ** -0.5,
        max_expected_seq_len=64,
    )


def granite_hidden_dim(cfg):
    h = int(cfg["hidden_grow_factor"] * cfg["emb_dim"])
    m = cfg["multiple_of"]
    return m * ((h + m - 1) // m)


def _deinterleave_heads(w, nheads, head_dim):
    # Per-head column permutation [x0,x1,x2,x3,..] -> [x0,x2,.. | x1,x3,..].
    # Applied to the q/k columns of the fused in_proj so the FMS interleaved
    # (complex-pair) rotary becomes a rotate-half rotary inside the attention
    # kernel.  Scores q.k are invariant (q and k permuted identically); v and
    # wo are untouched, so the block output is bit-for-bit the same math.
    d = w.shape[0]
    return w.reshape(d, nheads, head_dim // 2, 2).swapaxes(2, 3).reshape(
        d, nheads * head_dim)


def init_params(cfg, key):
    D = cfg["emb_dim"]
    H = cfg["nheads"]
    KVH = cfg["kvheads"] if cfg["kvheads"] != 0 else cfg["nheads"]
    hd = D // H
    hidden = granite_hidden_dim(cfg)
    keys = jax.random.split(key, 1 + cfg["nlayers"])

    # Embedding: std = emb_dim**-0.5; torch padding_idx=-1 row (vocab-1) zeroed.
    # embedding_multiplier is folded into the table (exactly equivalent, saves
    # an elementwise HBM pass per forward).
    emb = jax.random.normal(keys[0], (cfg["src_vocab_size"], D), jnp.float32) * D ** -0.5
    emb = emb.at[cfg["src_vocab_size"] - 1].set(0.0)
    emb = (emb * cfg["embedding_multiplier"]).astype(jnp.bfloat16)

    def lin(k, fan_in, fan_out):
        return jax.random.normal(k, (fan_in, fan_out), jnp.float32) * fan_in ** -0.5

    layers = []
    for i in range(cfg["nlayers"]):
        lk = jax.random.split(keys[1 + i], 6)

        # LayerNormParameterized scale vectors (init = ones) are folded into
        # the rows of the following matmul weights:
        #   (rmsnorm(x) * nw) @ W == rmsnorm(x) @ (nw[:, None] * W)
        # This removes a (tm, D) elementwise multiply and one input stream per
        # fused-norm matmul kernel.
        ln_w = jnp.ones((D,), jnp.float32)
        ff_ln_w = jnp.ones((D,), jnp.float32)

        wq = _deinterleave_heads(lin(lk[0], D, H * hd), H, hd)
        wk = _deinterleave_heads(lin(lk[1], D, KVH * hd), KVH, hd)
        wv = lin(lk[2], D, KVH * hd)
        wqkv = ln_w[:, None] * jnp.concatenate([wq, wk, wv], axis=1)

        wg1 = lin(lk[3], D, 2 * hidden)   # torch keeps gate|up fused in one weight
        layers.append(dict(
            wqkv=wqkv.astype(jnp.bfloat16),
            wo=lin(lk[4], H * hd, D).astype(jnp.bfloat16),
            # Split storage of the fused gate/up weight so the GLU kernel's
            # BlockSpecs read gate/up tiles directly (no JAX-level slice copy);
            # ff_ln scale folded into both halves.
            wg=(ff_ln_w[:, None] * wg1[:, :hidden]).astype(jnp.bfloat16),
            wu=(ff_ln_w[:, None] * wg1[:, hidden:]).astype(jnp.bfloat16),
            w2=lin(lk[5], hidden, D).astype(jnp.bfloat16),
        ))
    return dict(embedding=emb, layers=layers,
                dec_norm_w=jnp.ones((D,), jnp.float32))


def granite_block(x2, p, cfg, cos, sin, B, T):
    # x2: [M=B*T, D] bf16 (flattened hidden states)
    M, D = x2.shape
    H = cfg["nheads"]
    KVH = cfg["kvheads"] if cfg["kvheads"] != 0 else cfg["nheads"]
    hd = D // H
    eps = cfg["norm_eps"]
    res_mult = cfg["residual_multiplier"]

    # --- attention sub-layer: (ln + qkv) -> attn(+rotary) -> (wo + residual) ---
    qkv = norm_matmul(x2, p["wqkv"], eps)                         # [M, (H+2KVH)*hd]
    attn = causal_attention(qkv.reshape(B, T, -1), cos, sin,
                            nheads=H, kvheads=KVH, head_dim=hd,
                            scale=cfg["attention_multiplier"])    # [B, T, H*hd]
    x2 = matmul_residual(attn.reshape(M, H * hd), p["wo"], x2, res_mult)

    # --- feed-forward sub-layer: (ff_ln + gate/up + swiglu) -> (w2 + residual) ---
    act = norm_glu(x2, p["wg"], p["wu"], eps)                     # [M, hidden]
    x2 = matmul_residual(act, p["w2"], x2, res_mult)
    return x2


def granite_headless_forward(params, cfg, x_in):
    # x_in: [B, T] int32 token ids.  use_cache=False, p_dropout=0.0 path.
    B, T = x_in.shape
    D = cfg["emb_dim"]
    hd = D // cfg["nheads"]
    vocab = cfg["src_vocab_size"]

    # torch nn.Embedding(padding_idx=-1) => pad rows map to row vocab-1.
    ids = jnp.where(x_in < 0, vocab - 1, x_in)
    x = jnp.take(params["embedding"], ids, axis=0)                # [B, T, D] bf16
    x2 = x.reshape(B * T, D)

    cos, sin = rotary_tables(T, hd, cfg["rope_theta"])            # position_ids = arange(T)

    for p in params["layers"]:
        x2 = granite_block(x2, p, cfg, cos, sin, B, T)

    dec_out = rmsnorm(x2, params["dec_norm_w"], cfg["norm_eps"]).reshape(B, T, D)
    # TODO(synk): use_cache / past_key_value_states (KV cache) path not
    # implemented; returns empty cache list like the torch module with use_cache=False.
    return dec_out, []


if __name__ == "__main__":
    cfg = make_config()
    key = jax.random.PRNGKey(0)
    pkey, tkey = jax.random.split(key)

    params = init_params(cfg, pkey)

    B, T = 2, 8
    x_in = jax.random.randint(tkey, (B, T), 0, cfg["src_vocab_size"], dtype=jnp.int32)

    fwd = jax.jit(functools.partial(granite_headless_forward, params, cfg))
    dec_out, _cache = fwd(x_in)
    dec_out = jax.block_until_ready(dec_out)

    assert dec_out.shape == (B, T, cfg["emb_dim"])
    assert bool(jnp.all(jnp.isfinite(dec_out.astype(jnp.float32))))
    print("KERNEL_OK")
</pallas_src>

<mosaic_0001>
module attributes {stable_mosaic.version = 11 : i64} {
  func.func @_norm_matmul_kernel(%arg0: i32, %arg1: i32, %arg2: memref<16x64xbf16, #tpu.memory_space<vmem>>, %arg3: memref<64x192xbf16, #tpu.memory_space<vmem>>, %arg4: memref<16x192xbf16, #tpu.memory_space<vmem>>, %arg5: memref<16x64xbf16, #tpu.memory_space<vmem>>) attributes {dimension_semantics = [#tpu.dimension_semantics<parallel>, #tpu.dimension_semantics<arbitrary>], iteration_bounds = array<i64: 1, 1>, scalar_prefetch = 0 : i64, scratch_operands = 1 : i64, tpu.core_type = #tpu.core_type<tc>, window_params = [{transform_indices = @transform_0, window_bounds = array<i64: 16, 64>}, {transform_indices = @transform_1, window_bounds = array<i64: 64, 192>}, {transform_indices = @transform_2, window_bounds = array<i64: 16, 192>}]} {
    %c0_i32 = arith.constant 0 : i32
    %0 = arith.cmpi eq, %arg1, %c0_i32 : i32
    %1 = arith.extui %0 : i1 to i32
    %c0_i32_0 = arith.constant 0 : i32
    %2 = arith.cmpi ne, %1, %c0_i32_0 : i32
    scf.if %2 {
      %c0_6 = arith.constant 0 : index
      %c0_7 = arith.constant 0 : index
      %8 = vector.load %arg2[%c0_6, %c0_7] : memref<16x64xbf16, #tpu.memory_space<vmem>>, vector<16x64xbf16>
      %9 = arith.extf %8 : vector<16x64xbf16> to vector<16x64xf32>
      %10 = arith.mulf %9, %9 : vector<16x64xf32>
      %cst_8 = arith.constant dense<0.000000e+00> : vector<16xf32>
      %11 = vector.multi_reduction <add>, %10, %cst_8 [1] : vector<16x64xf32> to vector<16xf32>
      %12 = vector.shape_cast %11 : vector<16xf32> to vector<16x1xf32>
      %cst_9 = arith.constant 6.400000e+01 : f32
      %13 = vector.broadcast %cst_9 : f32 to vector<16x1xf32>
      %14 = arith.divf %12, %13 : vector<16x1xf32>
      %cst_10 = arith.constant 9.99999974E-6 : f32
      %15 = vector.broadcast %cst_10 : f32 to vector<16x1xf32>
      %16 = arith.addf %14, %15 : vector<16x1xf32>
      %17 = math.rsqrt %16 : vector<16x1xf32>
      %18 = vector.broadcast %17 : vector<16x1xf32> to vector<16x64xf32>
      %19 = arith.mulf %9, %18 : vector<16x64xf32>
      %20 = arith.truncf %19 : vector<16x64xf32> to vector<16x64xbf16>
      %c0_11 = arith.constant 0 : index
      %c0_12 = arith.constant 0 : index
      %21 = vector.load %arg5[%c0_11, %c0_12] : memref<16x64xbf16, #tpu.memory_space<vmem>>, vector<16x64xbf16>
      tpu.vector_store %arg5[%c0_11, %c0_12], %20 {strides = array<i32>} : memref<16x64xbf16, #tpu.memory_space<vmem>>, vector<16x64xbf16>,
    } else {
    }
    %c0 = arith.constant 0 : index
    %c0_1 = arith.constant 0 : index
    %3 = vector.load %arg5[%c0, %c0_1] : memref<16x64xbf16, #tpu.memory_space<vmem>>, vector<16x64xbf16>
    %c0_2 = arith.constant 0 : index
    %c0_3 = arith.constant 0 : index
    %4 = vector.load %arg3[%c0_2, %c0_3] : memref<64x192xbf16, #tpu.memory_space<vmem>>, vector<64x192xbf16>
    %cst = arith.constant dense<0.000000e+00> : vector<16x192xf32>
    %5 = tpu.matmul %3, %4, %cst {dimension_numbers = #tpu.dot_dimension_numbers<[1], [0], [0], [1], [0, 0, 1, 1], [], []>} : vector<16x64xbf16>, vector<64x192xbf16>, vector<16x192xf32> -> vector<16x192xf32>
    %6 = arith.truncf %5 : vector<16x192xf32> to vector<16x192xbf16>
    %c0_4 = arith.constant 0 : index
    %c0_5 = arith.constant 0 : index
    %7 = vector.load %arg4[%c0_4, %c0_5] : memref<16x192xbf16, #tpu.memory_space<vmem>>, vector<16x192xbf16>
    tpu.vector_store %arg4[%c0_4, %c0_5], %6 {strides = array<i32>} : memref<16x192xbf16, #tpu.memory_space<vmem>>, vector<16x192xbf16>,
    return
  }
  func.func @transform_0(%arg0: i32, %arg1: i32) -> (i32, i32) {
    %c0_i32 = arith.constant 0 : i32
    %c0_i32_0 = arith.constant 0 : i32
    return %arg0, %c0_i32 : i32, i32
  }
  func.func @transform_1(%arg0: i32, %arg1: i32) -> (i32, i32) {
    %c0_i32 = arith.constant 0 : i32
    %c0_i32_0 = arith.constant 0 : i32
    return %c0_i32, %arg1 : i32, i32
  }
  func.func @transform_2(%arg0: i32, %arg1: i32) -> (i32, i32) {
    %c0_i32 = arith.constant 0 : i32
    return %arg0, %arg1 : i32, i32
  }
}

module attributes {stable_mosaic.version = 11 : i64} {
  func.func @_matmul_residual_kernel(%arg0: i32, %arg1: i32, %arg2: i32, %arg3: memref<16x64xbf16, #tpu.memory_space<vmem>>, %arg4: memref<64x64xbf16, #tpu.memory_space<vmem>>, %arg5: memref<16x64xbf16, #tpu.memory_space<vmem>>, %arg6: memref<16x64xbf16, #tpu.memory_space<vmem>>, %arg7: memref<16x64xf32, #tpu.memory_space<vmem>>) attributes {dimension_semantics = [#tpu.dimension_semantics<parallel>, #tpu.dimension_semantics<parallel>, #tpu.dimension_semantics<arbitrary>], iteration_bounds = array<i64: 1, 1, 1>, scalar_prefetch = 0 : i64, scratch_operands = 1 : i64, tpu.core_type = #tpu.core_type<tc>, window_params = [{transform_indices = @transform_0, window_bounds = array<i64: 16, 64>}, {transform_indices = @transform_1, window_bounds = array<i64: 64, 64>}, {transform_indices = @transform_2, window_bounds = array<i64: 16, 64>}, {transform_indices = @transform_3, window_bounds = array<i64: 16, 64>}]} {
    %c0_i32 = arith.constant 0 : i32
    %0 = arith.cmpi eq, %arg2, %c0_i32 : i32
    %1 = arith.extui %0 : i1 to i32
    %c0_i32_0 = arith.constant 0 : i32
    %2 = arith.cmpi ne, %1, %c0_i32_0 : i32
    scf.if %2 {
      %cst_10 = arith.constant 0.000000e+00 : f32
      %12 = vector.broadcast %cst_10 : f32 to vector<16x64xf32>
      %c0_11 = arith.constant 0 : index
      %c0_12 = arith.constant 0 : index
      %13 = vector.load %arg7[%c0_11, %c0_12] : memref<16x64xf32, #tpu.memory_space<vmem>>, vector<16x64xf32>
      tpu.vector_store %arg7[%c0_11, %c0_12], %12 {strides = array<i32>} : memref<16x64xf32, #tpu.memory_space<vmem>>, vector<16x64xf32>,
    } else {
    }
    %c0 = arith.constant 0 : index
    %c0_1 = arith.constant 0 : index
    %3 = vector.load %arg7[%c0, %c0_1] : memref<16x64xf32, #tpu.memory_space<vmem>>, vector<16x64xf32>
    %c0_2 = arith.constant 0 : index
    %c0_3 = arith.constant 0 : index
    %4 = vector.load %arg3[%c0_2, %c0_3] : memref<16x64xbf16, #tpu.memory_space<vmem>>, vector<16x64xbf16>
    %c0_4 = arith.constant 0 : index
    %c0_5 = arith.constant 0 : index
    %5 = vector.load %arg4[%c0_4, %c0_5] : memref<64x64xbf16, #tpu.memory_space<vmem>>, vector<64x64xbf16>
    %cst = arith.constant dense<0.000000e+00> : vector<16x64xf32>
    %6 = tpu.matmul %4, %5, %cst {dimension_numbers = #tpu.dot_dimension_numbers<[1], [0], [0], [1], [0, 0, 1, 1], [], []>} : vector<16x64xbf16>, vector<64x64xbf16>, vector<16x64xf32> -> vector<16x64xf32>
    %7 = arith.addf %3, %6 : vector<16x64xf32>
    %c0_6 = arith.constant 0 : index
    %c0_7 = arith.constant 0 : index
    %8 = vector.load %arg7[%c0_6, %c0_7] : memref<16x64xf32, #tpu.memory_space<vmem>>, vector<16x64xf32>
    tpu.vector_store %arg7[%c0_6, %c0_7], %7 {strides = array<i32>} : memref<16x64xf32, #tpu.memory_space<vmem>>, vector<16x64xf32>,
    %c0_i32_8 = arith.constant 0 : i32
    %9 = arith.cmpi eq, %arg2, %c0_i32_8 : i32
    %10 = arith.extui %9 : i1 to i32
    %c0_i32_9 = arith.constant 0 : i32
    %11 = arith.cmpi ne, %10, %c0_i32_9 : i32
    scf.if %11 {
      %c0_10 = arith.constant 0 : index
      %c0_11 = arith.constant 0 : index
      %12 = vector.load %arg7[%c0_10, %c0_11] : memref<16x64xf32, #tpu.memory_space<vmem>>, vector<16x64xf32>
      %cst_12 = arith.constant 5.000000e-01 : f32
      %13 = vector.broadcast %cst_12 : f32 to vector<16x64xf32>
      %14 = arith.mulf %12, %13 : vector<16x64xf32>
      %c0_13 = arith.constant 0 : index
      %c0_14 = arith.constant 0 : index
      %15 = vector.load %arg5[%c0_13, %c0_14] : memref<16x64xbf16, #tpu.memory_space<vmem>>, vector<16x64xbf16>
      %16 = arith.extf %15 : vector<16x64xbf16> to vector<16x64xf32>
      %17 = arith.addf %14, %16 : vector<16x64xf32>
      %18 = arith.truncf %17 : vector<16x64xf32> to vector<16x64xbf16>
      %c0_15 = arith.constant 0 : index
      %c0_16 = arith.constant 0 : index
      %19 = vector.load %arg6[%c0_15, %c0_16] : memref<16x64xbf16, #tpu.memory_space<vmem>>, vector<16x64xbf16>
      tpu.vector_store %arg6[%c0_15, %c0_16], %18 {strides = array<i32>} : memref<16x64xbf16, #tpu.memory_space<vmem>>, vector<16x64xbf16>,
    } else {
    }
    return
  }
  func.func @transform_0(%arg0: i32, %arg1: i32, %arg2: i32) -> (i32, i32) {
    %c0_i32 = arith.constant 0 : i32
    return %arg0, %arg2 : i32, i32
  }
  func.func @transform_1(%arg0: i32, %arg1: i32, %arg2: i32) -> (i32, i32) {
    %c0_i32 = arith.constant 0 : i32
    return %arg2, %arg1 : i32, i32
  }
  func.func @transform_2(%arg0: i32, %arg1: i32, %arg2: i32) -> (i32, i32) {
    %c0_i32 = arith.constant 0 : i32
    return %arg0, %arg1 : i32, i32
  }
  func.func @transform_3(%arg0: i32, %arg1: i32, %arg2: i32) -> (i32, i32) {
    %c0_i32 = arith.constant 0 : i32
    return %arg0, %arg1 : i32, i32
  }
}

module attributes {stable_mosaic.version = 11 : i64} {
  func.func @_attn_kernel(%arg0: i32, %arg1: memref<1x8x192xbf16, #tpu.memory_space<vmem>>, %arg2: memref<8x16xf32, #tpu.memory_space<vmem>>, %arg3: memref<8x16xf32, #tpu.memory_space<vmem>>, %arg4: memref<1x8x64xbf16, #tpu.memory_space<vmem>>, %arg5: memref<8x64xf32, #tpu.memory_space<vmem>>) attributes {dimension_semantics = [#tpu.dimension_semantics<parallel>], iteration_bounds = array<i64: 2>, scalar_prefetch = 0 : i64, scratch_operands = 1 : i64, tpu.core_type = #tpu.core_type<tc>, window_params = [{transform_indices = @transform_0, window_bounds = array<i64: 1, 8, 192>}, {pipeline_mode = #tpu.pipeline_mode<synchronous>, transform_indices = @transform_1, window_bounds = array<i64: 8, 16>}, {pipeline_mode = #tpu.pipeline_mode<synchronous>, transform_indices = @transform_2, window_bounds = array<i64: 8, 16>}, {transform_indices = @transform_3, window_bounds = array<i64: 1, 8, 64>}]} {
    %c0 = arith.constant 0 : index
    %c0_0 = arith.constant 0 : index
    %c0_1 = arith.constant 0 : index
    %0 = vector.load %arg1[%c0, %c0_0, %c0_1] : memref<1x8x192xbf16, #tpu.memory_space<vmem>>, vector<1x8x192xbf16>
    %1 = vector.shape_cast %0 : vector<1x8x192xbf16> to vector<8x192xbf16>
    %c0_2 = arith.constant 0 : index
    %c0_3 = arith.constant 0 : index
    %2 = vector.load %arg2[%c0_2, %c0_3] : memref<8x16xf32, #tpu.memory_space<vmem>>, vector<8x16xf32>
    %c0_4 = arith.constant 0 : index
    %c0_5 = arith.constant 0 : index
    %3 = vector.load %arg3[%c0_4, %c0_5] : memref<8x16xf32, #tpu.memory_space<vmem>>, vector<8x16xf32>
    %4 = tpu.iota {dimensions = array<i32: 0>} : vector<8x8xi32>
    %5 = tpu.iota {dimensions = array<i32: 1>} : vector<8x8xi32>
    %6 = arith.cmpi sle, %5, %4 : vector<8x8xi32>
    %7 = vector.extract_strided_slice %1 {offsets = [0, 64], sizes = [8, 16], strides = [1, 1]} : vector<8x192xbf16> to vector<8x16xbf16>
    %8 = arith.extf %7 : vector<8x16xbf16> to vector<8x16xf32>
    %9 = vector.extract_strided_slice %8 {offsets = [0, 8], sizes = [8, 8], strides = [1, 1]} : vector<8x16xf32> to vector<8x8xf32>
    %10 = vector.extract_strided_slice %8 {offsets = [0, 0], sizes = [8, 8], strides = [1, 1]} : vector<8x16xf32> to vector<8x8xf32>
    %11 = tpu.concatenate %9, %10 in 1 : vector<8x8xf32>, vector<8x8xf32> -> vector<8x16xf32>
    %12 = arith.mulf %8, %2 : vector<8x16xf32>
    %13 = arith.mulf %11, %3 : vector<8x16xf32>
    %14 = arith.addf %12, %13 : vector<8x16xf32>
    %15 = arith.truncf %14 : vector<8x16xf32> to vector<8x16xbf16>
    %16 = vector.extract_strided_slice %1 {offsets = [0, 128], sizes = [8, 16], strides = [1, 1]} : vector<8x192xbf16> to vector<8x16xbf16>
    %17 = vector.extract_strided_slice %1 {offsets = [0, 0], sizes = [8, 16], strides = [1, 1]} : vector<8x192xbf16> to vector<8x16xbf16>
    %18 = arith.extf %17 : vector<8x16xbf16> to vector<8x16xf32>
    %19 = vector.extract_strided_slice %18 {offsets = [0, 8], sizes = [8, 8], strides = [1, 1]} : vector<8x16xf32> to vector<8x8xf32>
    %20 = vector.extract_strided_slice %18 {offsets = [0, 0], sizes = [8, 8], strides = [1, 1]} : vector<8x16xf32> to vector<8x8xf32>
    %21 = tpu.concatenate %19, %20 in 1 : vector<8x8xf32>, vector<8x8xf32> -> vector<8x16xf32>
    %22 = arith.mulf %18, %2 : vector<8x16xf32>
    %23 = arith.mulf %21, %3 : vector<8x16xf32>
    %24 = arith.addf %22, %23 : vector<8x16xf32>
    %cst = arith.constant 2.500000e-01 : f32
    %25 = vector.broadcast %cst : f32 to vector<8x16xf32>
    %26 = arith.mulf %24, %25 : vector<8x16xf32>
    %27 = arith.truncf %26 : vector<8x16xf32> to vector<8x16xbf16>
    %cst_6 = arith.constant dense<0.000000e+00> : vector<8x8xf32>
    %28 = tpu.matmul %27, %15, %cst_6 {dimension_numbers = #tpu.dot_dimension_numbers<[1], [1], [0], [0], [0, 0, 1, 0], [], []>} : vector<8x16xbf16>, vector<8x16xbf16>, vector<8x8xf32> -> vector<8x8xf32>
    %cst_7 = arith.constant -1.000000e+30 : f32
    %29 = vector.broadcast %cst_7 : f32 to vector<8x8xf32>
    %30 = arith.select %6, %28, %29 : vector<8x8xi1>, vector<8x8xf32>
    %cst_8 = arith.constant dense<0xFF800000> : vector<8xf32>
    %31 = vector.multi_reduction <maximumf>, %30, %cst_8 [1] : vector<8x8xf32> to vector<8xf32>
    %32 = vector.shape_cast %31 : vector<8xf32> to vector<8x1xf32>
    %33 = vector.broadcast %32 : vector<8x1xf32> to vector<8x8xf32>
    %34 = arith.subf %30, %33 : vector<8x8xf32>
    %35 = math.exp %34 : vector<8x8xf32>
    %cst_9 = arith.constant dense<0.000000e+00> : vector<8xf32>
    %36 = vector.multi_reduction <add>, %35, %cst_9 [1] : vector<8x8xf32> to vector<8xf32>
    %37 = vector.shape_cast %36 : vector<8xf32> to vector<8x1xf32>
    %38 = arith.truncf %35 : vector<8x8xf32> to vector<8x8xbf16>
    %cst_10 = arith.constant dense<0.000000e+00> : vector<8x16xf32>
    %39 = tpu.matmul %38, %16, %cst_10 {dimension_numbers = #tpu.dot_dimension_numbers<[1], [0], [0], [1], [0, 0, 1, 1], [], []>} : vector<8x8xbf16>, vector<8x16xbf16>, vector<8x16xf32> -> vector<8x16xf32>
    %40 = vector.broadcast %37 : vector<8x1xf32> to vector<8x16xf32>
    %41 = arith.divf %39, %40 : vector<8x16xf32>
    %c0_11 = arith.constant 0 : index
    %c0_12 = arith.constant 0 : index
    %42 = vector.load %arg5[%c0_11, %c0_12] : memref<8x64xf32, #tpu.memory_space<vmem>>, vector<8x16xf32>
    tpu.vector_store %arg5[%c0_11, %c0_12], %41 {strides = array<i32>} : memref<8x64xf32, #tpu.memory_space<vmem>>, vector<8x16xf32>,
    %43 = vector.extract_strided_slice %1 {offsets = [0, 80], sizes = [8, 16], strides = [1, 1]} : vector<8x192xbf16> to vector<8x16xbf16>
    %44 = arith.extf %43 : vector<8x16xbf16> to vector<8x16xf32>
    %45 = vector.extract_strided_slice %44 {offsets = [0, 8], sizes = [8, 8], strides = [1, 1]} : vector<8x16xf32> to vector<8x8xf32>
    %46 = vector.extract_strided_slice %44 {offsets = [0, 0], sizes = [8, 8], strides = [1, 1]} : vector<8x16xf32> to vector<8x8xf32>
    %47 = tpu.concatenate %45, %46 in 1 : vector<8x8xf32>, vector<8x8xf32> -> vector<8x16xf32>
    %48 = arith.mulf %44, %2 : vector<8x16xf32>
    %49 = arith.mulf %47, %3 : vector<8x16xf32>
    %50 = arith.addf %48, %49 : vector<8x16xf32>
    %51 = arith.truncf %50 : vector<8x16xf32> to vector<8x16xbf16>
    %52 = vector.extract_strided_slice %1 {offsets = [0, 144], sizes = [8, 16], strides = [1, 1]} : vector<8x192xbf16> to vector<8x16xbf16>
    %53 = vector.extract_strided_slice %1 {offsets = [0, 16], sizes = [8, 16], strides = [1, 1]} : vector<8x192xbf16> to vector<8x16xbf16>
    %54 = arith.extf %53 : vector<8x16xbf16> to vector<8x16xf32>
    %55 = vector.extract_strided_slice %54 {offsets = [0, 8], sizes = [8, 8], strides = [1, 1]} : vector<8x16xf32> to vector<8x8xf32>
    %56 = vector.extract_strided_slice %54 {offsets = [0, 0], sizes = [8, 8], strides = [1, 1]} : vector<8x16xf32> to vector<8x8xf32>
    %57 = tpu.concatenate %55, %56 in 1 : vector<8x8xf32>, vector<8x8xf32> -> vector<8x16xf32>
    %58 = arith.mulf %54, %2 : vector<8x16xf32>
    %59 = arith.mulf %57, %3 : vector<8x16xf32>
    %60 = arith.addf %58, %59 : vector<8x16xf32>
    %cst_13 = arith.constant 2.500000e-01 : f32
    %61 = vector.broadcast %cst_13 : f32 to vector<8x16xf32>
    %62 = arith.mulf %60, %61 : vector<8x16xf32>
    %63 = arith.truncf %62 : vector<8x16xf32> to vector<8x16xbf16>
    %cst_14 = arith.constant dense<0.000000e+00> : vector<8x8xf32>
    %64 = tpu.matmul %63, %51, %cst_14 {dimension_numbers = #tpu.dot_dimension_numbers<[1], [1], [0], [0], [0, 0, 1, 0], [], []>} : vector<8x16xbf16>, vector<8x16xbf16>, vector<8x8xf32> -> vector<8x8xf32>
    %cst_15 = arith.constant -1.000000e+30 : f32
    %65 = vector.broadcast %cst_15 : f32 to vector<8x8xf32>
    %66 = arith.select %6, %64, %65 : vector<8x8xi1>, vector<8x8xf32>
    %cst_16 = arith.constant dense<0xFF800000> : vector<8xf32>
    %67 = vector.multi_reduction <maximumf>, %66, %cst_16 [1] : vector<8x8xf32> to vector<8xf32>
    %68 = vector.shape_cast %67 : vector<8xf32> to vector<8x1xf32>
    %69 = vector.broadcast %68 : vector<8x1xf32> to vector<8x8xf32>
    %70 = arith.subf %66, %69 : vector<8x8xf32>
    %71 = math.exp %70 : vector<8x8xf32>
    %cst_17 = arith.constant dense<0.000000e+00> : vector<8xf32>
    %72 = vector.multi_reduction <add>, %71, %cst_17 [1] : vector<8x8xf32> to vector<8xf32>
    %73 = vector.shape_cast %72 : vector<8xf32> to vector<8x1xf32>
    %74 = arith.truncf %71 : vector<8x8xf32> to vector<8x8xbf16>
    %cst_18 = arith.constant dense<0.000000e+00> : vector<8x16xf32>
    %75 = tpu.matmul %74, %52, %cst_18 {dimension_numbers = #tpu.dot_dimension_numbers<[1], [0], [0], [1], [0, 0, 1, 1], [], []>} : vector<8x8xbf16>, vector<8x16xbf16>, vector<8x16xf32> -> vector<8x16xf32>
    %76 = vector.broadcast %73 : vector<8x1xf32> to vector<8x16xf32>
    %77 = arith.divf %75, %76 : vector<8x16xf32>
    %c0_19 = arith.constant 0 : index
    %c16 = arith.constant 16 : index
    %78 = vector.load %arg5[%c0_19, %c16] : memref<8x64xf32, #tpu.memory_space<vmem>>, vector<8x16xf32>
    tpu.vector_store %arg5[%c0_19, %c16], %77 {strides = array<i32>} : memref<8x64xf32, #tpu.memory_space<vmem>>, vector<8x16xf32>,
    %79 = vector.extract_strided_slice %1 {offsets = [0, 96], sizes = [8, 16], strides = [1, 1]} : vector<8x192xbf16> to vector<8x16xbf16>
    %80 = arith.extf %79 : vector<8x16xbf16> to vector<8x16xf32>
    %81 = vector.extract_strided_slice %80 {offsets = [0, 8], sizes = [8, 8], strides = [1, 1]} : vector<8x16xf32> to vector<8x8xf32>
    %82 = vector.extract_strided_slice %80 {offsets = [0, 0], sizes = [8, 8], strides = [1, 1]} : vector<8x16xf32> to vector<8x8xf32>
    %83 = tpu.concatenate %81, %82 in 1 : vector<8x8xf32>, vector<8x8xf32> -> vector<8x16xf32>
    %84 = arith.mulf %80, %2 : vector<8x16xf32>
    %85 = arith.mulf %83, %3 : vector<8x16xf32>
    %86 = arith.addf %84, %85 : vector<8x16xf32>
    %87 = arith.truncf %86 : vector<8x16xf32> to vector<8x16xbf16>
    %88 = vector.extract_strided_slice %1 {offsets = [0, 160], sizes = [8, 16], strides = [1, 1]} : vector<8x192xbf16> to vector<8x16xbf16>
    %89 = vector.extract_strided_slice %1 {offsets = [0, 32], sizes = [8, 16], strides = [1, 1]} : vector<8x192xbf16> to vector<8x16xbf16>
    %90 = arith.extf %89 : vector<8x16xbf16> to vector<8x16xf32>
    %91 = vector.extract_strided_slice %90 {offsets = [0, 8], sizes = [8, 8], strides = [1, 1]} : vector<8x16xf32> to vector<8x8xf32>
    %92 = vector.extract_strided_slice %90 {offsets = [0, 0], sizes = [8, 8], strides = [1, 1]} : vector<8x16xf32> to vector<8x8xf32>
    %93 = tpu.concatenate %91, %92 in 1 : vector<8x8xf32>, vector<8x8xf32> -> vector<8x16xf32>
    %94 = arith.mulf %90, %2 : vector<8x16xf32>
    %95 = arith.mulf %93, %3 : vector<8x16xf32>
    %96 = arith.addf %94, %95 : vector<8x16xf32>
    %cst_20 = arith.constant 2.500000e-01 : f32
    %97 = vector.broadcast %cst_20 : f32 to vector<8x16xf32>
    %98 = arith.mulf %96, %97 : vector<8x16xf32>
    %99 = arith.truncf %98 : vector<8x16xf32> to vector<8x16xbf16>
    %cst_21 = arith.constant dense<0.000000e+00> : vector<8x8xf32>
    %100 = tpu.matmul %99, %87, %cst_21 {dimension_numbers = #tpu.dot_dimension_numbers<[1], [1], [0], [0], [0, 0, 1, 0], [], []>} : vector<8x16xbf16>, vector<8x16xbf16>, vector<8x8xf32> -> vector<8x8xf32>
    %cst_22 = arith.constant -1.000000e+30 : f32
    %101 = vector.broadcast %cst_22 : f32 to vector<8x8xf32>
    %102 = arith.select %6, %100, %101 : vector<8x8xi1>, vector<8x8xf32>
    %cst_23 = arith.constant dense<0xFF800000> : vector<8xf32>
    %103 = vector.multi_reduction <maximumf>, %102, %cst_23 [1] : vector<8x8xf32> to vector<8xf32>
    %104 = vector.shape_cast %103 : vector<8xf32> to vector<8x1xf32>
    %105 = vector.broadcast %104 : vector<8x1xf32> to vector<8x8xf32>
    %106 = arith.subf %102, %105 : vector<8x8xf32>
    %107 = math.exp %106 : vector<8x8xf32>
    %cst_24 = arith.constant dense<0.000000e+00> : vector<8xf32>
    %108 = vector.multi_reduction <add>, %107, %cst_24 [1] : vector<8x8xf32> to vector<8xf32>
    %109 = vector.shape_cast %108 : vector<8xf32> to vector<8x1xf32>
    %110 = arith.truncf %107 : vector<8x8xf32> to vector<8x8xbf16>
    %cst_25 = arith.constant dense<0.000000e+00> : vector<8x16xf32>
    %111 = tpu.matmul %110, %88, %cst_25 {dimension_numbers = #tpu.dot_dimension_numbers<[1], [0], [0], [1], [0, 0, 1, 1], [], []>} : vector<8x8xbf16>, vector<8x16xbf16>, vector<8x16xf32> -> vector<8x16xf32>
    %112 = vector.broadcast %109 : vector<8x1xf32> to vector<8x16xf32>
    %113 = arith.divf %111, %112 : vector<8x16xf32>
    %c0_26 = arith.constant 0 : index
    %c32 = arith.constant 32 : index
    %114 = vector.load %arg5[%c0_26, %c32] : memref<8x64xf32, #tpu.memory_space<vmem>>, vector<8x16xf32>
    tpu.vector_store %arg5[%c0_26, %c32], %113 {strides = array<i32>} : memref<8x64xf32, #tpu.memory_space<vmem>>, vector<8x16xf32>,
    %115 = vector.extract_strided_slice %1 {offsets = [0, 112], sizes = [8, 16], strides = [1, 1]} : vector<8x192xbf16> to vector<8x16xbf16>
    %116 = arith.extf %115 : vector<8x16xbf16> to vector<8x16xf32>
    %117 = vector.extract_strided_slice %116 {offsets = [0, 8], sizes = [8, 8], strides = [1, 1]} : vector<8x16xf32> to vector<8x8xf32>
    %118 = vector.extract_strided_slice %116 {offsets = [0, 0], sizes = [8, 8], strides = [1, 1]} : vector<8x16xf32> to vector<8x8xf32>
    %119 = tpu.concatenate %117, %118 in 1 : vector<8x8xf32>, vector<8x8xf32> -> vector<8x16xf32>
    %120 = arith.mulf %116, %2 : vector<8x16xf32>
    %121 = arith.mulf %119, %3 : vector<8x16xf32>
    %122 = arith.addf %120, %121 : vector<8x16xf32>
    %123 = arith.truncf %122 : vector<8x16xf32> to vector<8x16xbf16>
    %124 = vector.extract_strided_slice %1 {offsets = [0, 176], sizes = [8, 16], strides = [1, 1]} : vector<8x192xbf16> to vector<8x16xbf16>
    %125 = vector.extract_strided_slice %1 {offsets = [0, 48], sizes = [8, 16], strides = [1, 1]} : vector<8x192xbf16> to vector<8x16xbf16>
    %126 = arith.extf %125 : vector<8x16xbf16> to vector<8x16xf32>
    %127 = vector.extract_strided_slice %126 {offsets = [0, 8], sizes = [8, 8], strides = [1, 1]} : vector<8x16xf32> to vector<8x8xf32>
    %128 = vector.extract_strided_slice %126 {offsets = [0, 0], sizes = [8, 8], strides = [1, 1]} : vector<8x16xf32> to vector<8x8xf32>
    %129 = tpu.concatenate %127, %128 in 1 : vector<8x8xf32>, vector<8x8xf32> -> vector<8x16xf32>
    %130 = arith.mulf %126, %2 : vector<8x16xf32>
    %131 = arith.mulf %129, %3 : vector<8x16xf32>
    %132 = arith.addf %130, %131 : vector<8x16xf32>
    %cst_27 = arith.constant 2.500000e-01 : f32
    %133 = vector.broadcast %cst_27 : f32 to vector<8x16xf32>
    %134 = arith.mulf %132, %133 : vector<8x16xf32>
    %135 = arith.truncf %134 : vector<8x16xf32> to vector<8x16xbf16>
    %cst_28 = arith.constant dense<0.000000e+00> : vector<8x8xf32>
    %136 = tpu.matmul %135, %123, %cst_28 {dimension_numbers = #tpu.dot_dimension_numbers<[1], [1], [0], [0], [0, 0, 1, 0], [], []>} : vector<8x16xbf16>, vector<8x16xbf16>, vector<8x8xf32> -> vector<8x8xf32>
    %cst_29 = arith.constant -1.000000e+30 : f32
    %137 = vector.broadcast %cst_29 : f32 to vector<8x8xf32>
    %138 = arith.select %6, %136, %137 : vector<8x8xi1>, vector<8x8xf32>
    %cst_30 = arith.constant dense<0xFF800000> : vector<8xf32>
    %139 = vector.multi_reduction <maximumf>, %138, %cst_30 [1] : vector<8x8xf32> to vector<8xf32>
    %140 = vector.shape_cast %139 : vector<8xf32> to vector<8x1xf32>
    %141 = vector.broadcast %140 : vector<8x1xf32> to vector<8x8xf32>
    %142 = arith.subf %138, %141 : vector<8x8xf32>
    %143 = math.exp %142 : vector<8x8xf32>
    %cst_31 = arith.constant dense<0.000000e+00> : vector<8xf32>
    %144 = vector.multi_reduction <add>, %143, %cst_31 [1] : vector<8x8xf32> to vector<8xf32>
    %145 = vector.shape_cast %144 : vector<8xf32> to vector<8x1xf32>
    %146 = arith.truncf %143 : vector<8x8xf32> to vector<8x8xbf16>
    %cst_32 = arith.constant dense<0.000000e+00> : vector<8x16xf32>
    %147 = tpu.matmul %146, %124, %cst_32 {dimension_numbers = #tpu.dot_dimension_numbers<[1], [0], [0], [1], [0, 0, 1, 1], [], []>} : vector<8x8xbf16>, vector<8x16xbf16>, vector<8x16xf32> -> vector<8x16xf32>
    %148 = vector.broadcast %145 : vector<8x1xf32> to vector<8x16xf32>
    %149 = arith.divf %147, %148 : vector<8x16xf32>
    %c0_33 = arith.constant 0 : index
    %c48 = arith.constant 48 : index
    %150 = vector.load %arg5[%c0_33, %c48] : memref<8x64xf32, #tpu.memory_space<vmem>>, vector<8x16xf32>
    tpu.vector_store %arg5[%c0_33, %c48], %149 {strides = array<i32>} : memref<8x64xf32, #tpu.memory_space<vmem>>, vector<8x16xf32>,
    %c0_34 = arith.constant 0 : index
    %c0_35 = arith.constant 0 : index
    %151 = vector.load %arg5[%c0_34, %c0_35] : memref<8x64xf32, #tpu.memory_space<vmem>>, vector<8x64xf32>
    %152 = arith.truncf %151 : vector<8x64xf32> to vector<8x64xbf16>
    %c0_36 = arith.constant 0 : index
    %c0_37 = arith.constant 0 : index
    %c0_38 = arith.constant 0 : index
    %153 = vector.load %arg4[%c0_36, %c0_37, %c0_38] : memref<1x8x64xbf16, #tpu.memory_space<vmem>>, vector<1x8x64xbf16>
    %154 = vector.shape_cast %153 : vector<1x8x64xbf16> to vector<8x64xbf16>
    %155 = vector.shape_cast %152 : vector<8x64xbf16> to vector<1x8x64xbf16>
    tpu.vector_store %arg4[%c0_36, %c0_37, %c0_38], %155 {strides = array<i32>} : memref<1x8x64xbf16, #tpu.memory_space<vmem>>, vector<1x8x64xbf16>,
    return
  }
  func.func @transform_0(%arg0: i32) -> (i32, i32, i32) {
    %c0_i32 = arith.constant 0 : i32
    %c0_i32_0 = arith.constant 0 : i32
    %c0_i32_1 = arith.constant 0 : i32
    return %arg0, %c0_i32, %c0_i32_0 : i32, i32, i32
  }
  func.func @transform_1(%arg0: i32) -> (i32, i32) {
    %c0_i32 = arith.constant 0 : i32
    %c0_i32_0 = arith.constant 0 : i32
    %c0_i32_1 = arith.constant 0 : i32
    return %c0_i32, %c0_i32_0 : i32, i32
  }
  func.func @transform_2(%arg0: i32) -> (i32, i32) {
    %c0_i32 = arith.constant 0 : i32
    %c0_i32_0 = arith.constant 0 : i32
    %c0_i32_1 = arith.constant 0 : i32
    return %c0_i32, %c0_i32_0 : i32, i32
  }
  func.func @transform_3(%arg0: i32) -> (i32, i32, i32) {
    %c0_i32 = arith.constant 0 : i32
    %c0_i32_0 = arith.constant 0 : i32
    %c0_i32_1 = arith.constant 0 : i32
    return %arg0, %c0_i32, %c0_i32_0 : i32, i32, i32
  }
}

module attributes {stable_mosaic.version = 11 : i64} {
  func.func @_norm_glu_kernel(%arg0: i32, %arg1: i32, %arg2: memref<16x64xbf16, #tpu.memory_space<vmem>>, %arg3: memref<64x192xbf16, #tpu.memory_space<vmem>>, %arg4: memref<64x192xbf16, #tpu.memory_space<vmem>>, %arg5: memref<16x192xbf16, #tpu.memory_space<vmem>>, %arg6: memref<16x64xbf16, #tpu.memory_space<vmem>>) attributes {dimension_semantics = [#tpu.dimension_semantics<parallel>, #tpu.dimension_semantics<arbitrary>], iteration_bounds = array<i64: 1, 1>, scalar_prefetch = 0 : i64, scratch_operands = 1 : i64, tpu.core_type = #tpu.core_type<tc>, window_params = [{transform_indices = @transform_0, window_bounds = array<i64: 16, 64>}, {transform_indices = @transform_1, window_bounds = array<i64: 64, 192>}, {transform_indices = @transform_2, window_bounds = array<i64: 64, 192>}, {transform_indices = @transform_3, window_bounds = array<i64: 16, 192>}]} {
    %c0_i32 = arith.constant 0 : i32
    %0 = arith.cmpi eq, %arg1, %c0_i32 : i32
    %1 = arith.extui %0 : i1 to i32
    %c0_i32_0 = arith.constant 0 : i32
    %2 = arith.cmpi ne, %1, %c0_i32_0 : i32
    scf.if %2 {
      %c0_10 = arith.constant 0 : index
      %c0_11 = arith.constant 0 : index
      %17 = vector.load %arg2[%c0_10, %c0_11] : memref<16x64xbf16, #tpu.memory_space<vmem>>, vector<16x64xbf16>
      %18 = arith.extf %17 : vector<16x64xbf16> to vector<16x64xf32>
      %19 = arith.mulf %18, %18 : vector<16x64xf32>
      %cst_12 = arith.constant dense<0.000000e+00> : vector<16xf32>
      %20 = vector.multi_reduction <add>, %19, %cst_12 [1] : vector<16x64xf32> to vector<16xf32>
      %21 = vector.shape_cast %20 : vector<16xf32> to vector<16x1xf32>
      %cst_13 = arith.constant 6.400000e+01 : f32
      %22 = vector.broadcast %cst_13 : f32 to vector<16x1xf32>
      %23 = arith.divf %21, %22 : vector<16x1xf32>
      %cst_14 = arith.constant 9.99999974E-6 : f32
      %24 = vector.broadcast %cst_14 : f32 to vector<16x1xf32>
      %25 = arith.addf %23, %24 : vector<16x1xf32>
      %26 = math.rsqrt %25 : vector<16x1xf32>
      %27 = vector.broadcast %26 : vector<16x1xf32> to vector<16x64xf32>
      %28 = arith.mulf %18, %27 : vector<16x64xf32>
      %29 = arith.truncf %28 : vector<16x64xf32> to vector<16x64xbf16>
      %c0_15 = arith.constant 0 : index
      %c0_16 = arith.constant 0 : index
      %30 = vector.load %arg6[%c0_15, %c0_16] : memref<16x64xbf16, #tpu.memory_space<vmem>>, vector<16x64xbf16>
      tpu.vector_store %arg6[%c0_15, %c0_16], %29 {strides = array<i32>} : memref<16x64xbf16, #tpu.memory_space<vmem>>, vector<16x64xbf16>,
    } else {
    }
    %c0 = arith.constant 0 : index
    %c0_1 = arith.constant 0 : index
    %3 = vector.load %arg6[%c0, %c0_1] : memref<16x64xbf16, #tpu.memory_space<vmem>>, vector<16x64xbf16>
    %c0_2 = arith.constant 0 : index
    %c0_3 = arith.constant 0 : index
    %4 = vector.load %arg3[%c0_2, %c0_3] : memref<64x192xbf16, #tpu.memory_space<vmem>>, vector<64x192xbf16>
    %cst = arith.constant dense<0.000000e+00> : vector<16x192xf32>
    %5 = tpu.matmul %3, %4, %cst {dimension_numbers = #tpu.dot_dimension_numbers<[1], [0], [0], [1], [0, 0, 1, 1], [], []>} : vector<16x64xbf16>, vector<64x192xbf16>, vector<16x192xf32> -> vector<16x192xf32>
    %c0_4 = arith.constant 0 : index
    %c0_5 = arith.constant 0 : index
    %6 = vector.load %arg4[%c0_4, %c0_5] : memref<64x192xbf16, #tpu.memory_space<vmem>>, vector<64x192xbf16>
    %cst_6 = arith.constant dense<0.000000e+00> : vector<16x192xf32>
    %7 = tpu.matmul %3, %6, %cst_6 {dimension_numbers = #tpu.dot_dimension_numbers<[1], [0], [0], [1], [0, 0, 1, 1], [], []>} : vector<16x64xbf16>, vector<64x192xbf16>, vector<16x192xf32> -> vector<16x192xf32>
    %8 = arith.negf %5 : vector<16x192xf32>
    %9 = math.exp %8 : vector<16x192xf32>
    %cst_7 = arith.constant 1.000000e+00 : f32
    %10 = vector.broadcast %cst_7 : f32 to vector<16x192xf32>
    %11 = arith.addf %10, %9 : vector<16x192xf32>
    %12 = arith.divf %10, %11 : vector<16x192xf32>
    %13 = arith.mulf %5, %12 : vector<16x192xf32>
    %14 = arith.mulf %13, %7 : vector<16x192xf32>
    %15 = arith.truncf %14 : vector<16x192xf32> to vector<16x192xbf16>
    %c0_8 = arith.constant 0 : index
    %c0_9 = arith.constant 0 : index
    %16 = vector.load %arg5[%c0_8, %c0_9] : memref<16x192xbf16, #tpu.memory_space<vmem>>, vector<16x192xbf16>
    tpu.vector_store %arg5[%c0_8, %c0_9], %15 {strides = array<i32>} : memref<16x192xbf16, #tpu.memory_space<vmem>>, vector<16x192xbf16>,
    return
  }
  func.func @transform_0(%arg0: i32, %arg1: i32) -> (i32, i32) {
    %c0_i32 = arith.constant 0 : i32
    %c0_i32_0 = arith.constant 0 : i32
    return %arg0, %c0_i32 : i32, i32
  }
  func.func @transform_1(%arg0: i32, %arg1: i32) -> (i32, i32) {
    %c0_i32 = arith.constant 0 : i32
    %c0_i32_0 = arith.constant 0 : i32
    return %c0_i32, %arg1 : i32, i32
  }
  func.func @transform_2(%arg0: i32, %arg1: i32) -> (i32, i32) {
    %c0_i32 = arith.constant 0 : i32
    %c0_i32_0 = arith.constant 0 : i32
    return %c0_i32, %arg1 : i32, i32
  }
  func.func @transform_3(%arg0: i32, %arg1: i32) -> (i32, i32) {
    %c0_i32 = arith.constant 0 : i32
    return %arg0, %arg1 : i32, i32
  }
}

module attributes {stable_mosaic.version = 11 : i64} {
  func.func @_rmsnorm_kernel(%arg0: i32, %arg1: memref<16x64xbf16, #tpu.memory_space<vmem>>, %arg2: memref<1x64xf32, #tpu.memory_space<vmem>>, %arg3: memref<16x64xbf16, #tpu.memory_space<vmem>>) attributes {dimension_semantics = [#tpu.dimension_semantics<parallel>], iteration_bounds = array<i64: 1>, scalar_prefetch = 0 : i64, scratch_operands = 0 : i64, tpu.core_type = #tpu.core_type<tc>, window_params = [{transform_indices = @transform_0, window_bounds = array<i64: 16, 64>}, {pipeline_mode = #tpu.pipeline_mode<synchronous>, transform_indices = @transform_1, window_bounds = array<i64: 1, 64>}, {transform_indices = @transform_2, window_bounds = array<i64: 16, 64>}]} {
    %c0 = arith.constant 0 : index
    %c0_0 = arith.constant 0 : index
    %0 = vector.load %arg1[%c0, %c0_0] : memref<16x64xbf16, #tpu.memory_space<vmem>>, vector<16x64xbf16>
    %1 = arith.extf %0 : vector<16x64xbf16> to vector<16x64xf32>
    %2 = arith.mulf %1, %1 : vector<16x64xf32>
    %cst = arith.constant dense<0.000000e+00> : vector<16xf32>
    %3 = vector.multi_reduction <add>, %2, %cst [1] : vector<16x64xf32> to vector<16xf32>
    %4 = vector.shape_cast %3 : vector<16xf32> to vector<16x1xf32>
    %cst_1 = arith.constant 6.400000e+01 : f32
    %5 = vector.broadcast %cst_1 : f32 to vector<16x1xf32>
    %6 = arith.divf %4, %5 : vector<16x1xf32>
    %cst_2 = arith.constant 9.99999974E-6 : f32
    %7 = vector.broadcast %cst_2 : f32 to vector<16x1xf32>
    %8 = arith.addf %6, %7 : vector<16x1xf32>
    %9 = math.rsqrt %8 : vector<16x1xf32>
    %10 = vector.broadcast %9 : vector<16x1xf32> to vector<16x64xf32>
    %11 = arith.mulf %1, %10 : vector<16x64xf32>
    %12 = arith.truncf %11 : vector<16x64xf32> to vector<16x64xbf16>
    %c0_3 = arith.constant 0 : index
    %c0_4 = arith.constant 0 : index
    %13 = vector.load %arg2[%c0_3, %c0_4] : memref<1x64xf32, #tpu.memory_space<vmem>>, vector<1x64xf32>
    %14 = arith.truncf %13 : vector<1x64xf32> to vector<1x64xbf16>
    %15 = vector.broadcast %14 : vector<1x64xbf16> to vector<16x64xbf16>
    %16 = arith.mulf %12, %15 : vector<16x64xbf16>
    %c0_5 = arith.constant 0 : index
    %c0_6 = arith.constant 0 : index
    %17 = vector.load %arg3[%c0_5, %c0_6] : memref<16x64xbf16, #tpu.memory_space<vmem>>, vector<16x64xbf16>
    tpu.vector_store %arg3[%c0_5, %c0_6], %16 {strides = array<i32>} : memref<16x64xbf16, #tpu.memory_space<vmem>>, vector<16x64xbf16>,
    return
  }
  func.func @transform_0(%arg0: i32) -> (i32, i32) {
    %c0_i32 = arith.constant 0 : i32
    %c0_i32_0 = arith.constant 0 : i32
    return %arg0, %c0_i32 : i32, i32
  }
  func.func @transform_1(%arg0: i32) -> (i32, i32) {
    %c0_i32 = arith.constant 0 : i32
    %c0_i32_0 = arith.constant 0 : i32
    %c0_i32_1 = arith.constant 0 : i32
    return %c0_i32, %c0_i32_0 : i32, i32
  }
  func.func @transform_2(%arg0: i32) -> (i32, i32) {
    %c0_i32 = arith.constant 0 : i32
    %c0_i32_0 = arith.constant 0 : i32
    return %arg0, %c0_i32 : i32, i32
  }
}

module attributes {stable_mosaic.version = 11 : i64} {
  func.func @_matmul_residual_kernel(%arg0: i32, %arg1: i32, %arg2: i32, %arg3: memref<16x192xbf16, #tpu.memory_space<vmem>>, %arg4: memref<192x64xbf16, #tpu.memory_space<vmem>>, %arg5: memref<16x64xbf16, #tpu.memory_space<vmem>>, %arg6: memref<16x64xbf16, #tpu.memory_space<vmem>>, %arg7: memref<16x64xf32, #tpu.memory_space<vmem>>) attributes {dimension_semantics = [#tpu.dimension_semantics<parallel>, #tpu.dimension_semantics<parallel>, #tpu.dimension_semantics<arbitrary>], iteration_bounds = array<i64: 1, 1, 1>, scalar_prefetch = 0 : i64, scratch_operands = 1 : i64, tpu.core_type = #tpu.core_type<tc>, window_params = [{transform_indices = @transform_0, window_bounds = array<i64: 16, 192>}, {transform_indices = @transform_1, window_bounds = array<i64: 192, 64>}, {transform_indices = @transform_2, window_bounds = array<i64: 16, 64>}, {transform_indices = @transform_3, window_bounds = array<i64: 16, 64>}]} {
    %c0_i32 = arith.constant 0 : i32
    %0 = arith.cmpi eq, %arg2, %c0_i32 : i32
    %1 = arith.extui %0 : i1 to i32
    %c0_i32_0 = arith.constant 0 : i32
    %2 = arith.cmpi ne, %1, %c0_i32_0 : i32
    scf.if %2 {
      %cst_10 = arith.constant 0.000000e+00 : f32
      %12 = vector.broadcast %cst_10 : f32 to vector<16x64xf32>
      %c0_11 = arith.constant 0 : index
      %c0_12 = arith.constant 0 : index
      %13 = vector.load %arg7[%c0_11, %c0_12] : memref<16x64xf32, #tpu.memory_space<vmem>>, vector<16x64xf32>
      tpu.vector_store %arg7[%c0_11, %c0_12], %12 {strides = array<i32>} : memref<16x64xf32, #tpu.memory_space<vmem>>, vector<16x64xf32>,
    } else {
    }
    %c0 = arith.constant 0 : index
    %c0_1 = arith.constant 0 : index
    %3 = vector.load %arg7[%c0, %c0_1] : memref<16x64xf32, #tpu.memory_space<vmem>>, vector<16x64xf32>
    %c0_2 = arith.constant 0 : index
    %c0_3 = arith.constant 0 : index
    %4 = vector.load %arg3[%c0_2, %c0_3] : memref<16x192xbf16, #tpu.memory_space<vmem>>, vector<16x192xbf16>
    %c0_4 = arith.constant 0 : index
    %c0_5 = arith.constant 0 : index
    %5 = vector.load %arg4[%c0_4, %c0_5] : memref<192x64xbf16, #tpu.memory_space<vmem>>, vector<192x64xbf16>
    %cst = arith.constant dense<0.000000e+00> : vector<16x64xf32>
    %6 = tpu.matmul %4, %5, %cst {dimension_numbers = #tpu.dot_dimension_numbers<[1], [0], [0], [1], [0, 0, 1, 1], [], []>} : vector<16x192xbf16>, vector<192x64xbf16>, vector<16x64xf32> -> vector<16x64xf32>
    %7 = arith.addf %3, %6 : vector<16x64xf32>
    %c0_6 = arith.constant 0 : index
    %c0_7 = arith.constant 0 : index
    %8 = vector.load %arg7[%c0_6, %c0_7] : memref<16x64xf32, #tpu.memory_space<vmem>>, vector<16x64xf32>
    tpu.vector_store %arg7[%c0_6, %c0_7], %7 {strides = array<i32>} : memref<16x64xf32, #tpu.memory_space<vmem>>, vector<16x64xf32>,
    %c0_i32_8 = arith.constant 0 : i32
    %9 = arith.cmpi eq, %arg2, %c0_i32_8 : i32
    %10 = arith.extui %9 : i1 to i32
    %c0_i32_9 = arith.constant 0 : i32
    %11 = arith.cmpi ne, %10, %c0_i32_9 : i32
    scf.if %11 {
      %c0_10 = arith.constant 0 : index
      %c0_11 = arith.constant 0 : index
      %12 = vector.load %arg7[%c0_10, %c0_11] : memref<16x64xf32, #tpu.memory_space<vmem>>, vector<16x64xf32>
      %cst_12 = arith.constant 5.000000e-01 : f32
      %13 = vector.broadcast %cst_12 : f32 to vector<16x64xf32>
      %14 = arith.mulf %12, %13 : vector<16x64xf32>
      %c0_13 = arith.constant 0 : index
      %c0_14 = arith.constant 0 : index
      %15 = vector.load %arg5[%c0_13, %c0_14] : memref<16x64xbf16, #tpu.memory_space<vmem>>, vector<16x64xbf16>
      %16 = arith.extf %15 : vector<16x64xbf16> to vector<16x64xf32>
      %17 = arith.addf %14, %16 : vector<16x64xf32>
      %18 = arith.truncf %17 : vector<16x64xf32> to vector<16x64xbf16>
      %c0_15 = arith.constant 0 : index
      %c0_16 = arith.constant 0 : index
      %19 = vector.load %arg6[%c0_15, %c0_16] : memref<16x64xbf16, #tpu.memory_space<vmem>>, vector<16x64xbf16>
      tpu.vector_store %arg6[%c0_15, %c0_16], %18 {strides = array<i32>} : memref<16x64xbf16, #tpu.memory_space<vmem>>, vector<16x64xbf16>,
    } else {
    }
    return
  }
  func.func @transform_0(%arg0: i32, %arg1: i32, %arg2: i32) -> (i32, i32) {
    %c0_i32 = arith.constant 0 : i32
    return %arg0, %arg2 : i32, i32
  }
  func.func @transform_1(%arg0: i32, %arg1: i32, %arg2: i32) -> (i32, i32) {
    %c0_i32 = arith.constant 0 : i32
    return %arg2, %arg1 : i32, i32
  }
  func.func @transform_2(%arg0: i32, %arg1: i32, %arg2: i32) -> (i32, i32) {
    %c0_i32 = arith.constant 0 : i32
    return %arg0, %arg1 : i32, i32
  }
  func.func @transform_3(%arg0: i32, %arg1: i32, %arg2: i32) -> (i32, i32) {
    %c0_i32 = arith.constant 0 : i32
    return %arg0, %arg1 : i32, i32
  }
}

</mosaic_0001>

<bundles_post_ra>
// kernel: granite_headless_forward.13
= control target key start
LH: loop header
LB: loop body
LE: loop exit
PB: predicated region body
PF: predicated region fallthrough
CT: control target
= control target key end

     0   :  { %8 = vsyncpa [#allocation4], 0  ;;  %s434_s0 = inlined_call_operand.hbm [shape: bf16[16,64], index: 0, kind: input, shape index: {}]   ;;  %s435_s1 = inlined_call_operand.hbm [shape: bf16[64,64], index: 1, kind: input, shape index: {}]   ;;  %s436_s2 = inlined_call_operand.hbm [shape: bf16[16,64], index: 2, kind: input, shape index: {}]   ;;  %s437_s3 = inlined_call_operand.hbm [shape: bf16[16,64], index: 3, kind: output, shape index: {}]  }
   0x1   :  { %9 = vsyncpa [#allocation7], 0 }
   0x2   :  { %10 = vsyncpa [#allocation5], 0  ;;  %s334_s12 = smov [#allocation6]   ;;  %s335_s14 = smov [#allocation3]  }
   0x3   :  { %s28_s13 = sshll.u32 %s334_s12, 4  ;;  %s16_s15 = sshll.u32 %s335_s14, 4  ;;  %s29_s13 = int_to_ptr.vmem [resolvable:$true] %s28_s13  ;;  %s362_s15 = int_to_ptr.vmem [resolvable:$true] %s16_s15 }
   0x4   :  { %s240_s18 = scalar_lea.hbm %s435_s1, 512 }
   0x5   :  { %p241_p0 = scmp.ne.s32.totalorder %s435_s1, %s240_s18  ;;  %p244_p1 = scmp.lt.u32.totalorder %s240_s18, %s435_s1 }
   0x7   :  { %p246_p2 = pnand %p244_p1, %p241_p0 }
   0x9   :  { %249 = shalt.err (!%p246_p2)
}
   0xa   :  { %s250_s23 = scalar_lea.vmem %s29_s13, 512  ;;  %p255_p4 = scmp.lt.s32.totalorder %s29_s13, %s29_s13 }
   0xb   :  { %p251_p3 = scmp.ne.s32.totalorder %s29_s13, %s250_s23  ;;  %p256_p5 = scmp.lt.s32.totalorder %s250_s23, %s250_s23 }
   0xd   :  { %p257_p6 = por %p256_p5, %p255_p4 }
   0xf   :  { %p258_p7 = pnand %p257_p6, %p251_p3 }
  0x11   :  { %261 = shalt.err (!%p258_p7)
}
  0x12   :  { %s336_s24 = smov 64   ;;  %s337_s25 = smov 4  }
  0x13   :  { %34 = dma.hbm_to_vmem [thread:$0]  %s435_s1, 512, %s29_s13, [#allocation7], %s336_s24, %s336_s24, %s337_s25  }
  0x14   :  { %s262_s30 = scalar_lea.hbm %s434_s0, 128 }
  0x15   :  { %p263_p8 = scmp.ne.s32.totalorder %s434_s0, %s262_s30  ;;  %p266_p9 = scmp.lt.u32.totalorder %s262_s30, %s434_s0 }
  0x17   :  { %p268_p10 = pnand %p266_p9, %p263_p8 }
  0x19   :  { %271 = shalt.err (!%p268_p10)
}
  0x1a   :  { %s272_s8 = scalar_lea.vmem %s362_s15, 128  ;;  %p277_p12 = scmp.lt.s32.totalorder %s362_s15, %s362_s15 }
  0x1b   :  { %p273_p11 = scmp.ne.s32.totalorder %s362_s15, %s272_s8  ;;  %p278_p13 = scmp.lt.s32.totalorder %s272_s8, %s272_s8 }
  0x1d   :  { %p279_p0 = por %p278_p13, %p277_p12 }
  0x1f   :  { %p280_p1 = pnand %p279_p0, %p273_p11 }
  0x21   :  { %283 = shalt.err (!%p280_p1)
}
  0x22   :  { %22 = dma.hbm_to_vmem [thread:$0]  %s434_s0, 128, %s362_s15, [#allocation4], %s336_s24, %s336_s24, %s337_s25  }
  0x23   :  { %s338_s10 = smov [#allocation8]   ;;  %s284_s14 = scalar_lea.hbm %s436_s2, 128 }
  0x24   :  { %s40_s11 = sshll.u32 %s338_s10, 4  ;;  %p285_p2 = scmp.ne.s32.totalorder %s436_s2, %s284_s14  ;;  %s41_s11 = int_to_ptr.vmem [resolvable:$true] %s40_s11 }
  0x25   :  { %p288_p3 = scmp.lt.u32.totalorder %s284_s14, %s436_s2 }
  0x27   :  { %p290_p4 = pnand %p288_p3, %p285_p2 }
  0x29   :  { %293 = shalt.err (!%p290_p4)
}
  0x2a   :  { %s294_s20 = scalar_lea.vmem %s41_s11, 128  ;;  %p299_p6 = scmp.lt.s32.totalorder %s41_s11, %s41_s11 }
  0x2b   :  { %p295_p5 = scmp.ne.s32.totalorder %s41_s11, %s294_s20  ;;  %p300_p7 = scmp.lt.s32.totalorder %s294_s20, %s294_s20 }
  0x2d   :  { %p301_p8 = por %p300_p7, %p299_p6 }
  0x2f   :  { %p302_p9 = pnand %p301_p8, %p295_p5 }
  0x31   :  { %305 = shalt.err (!%p302_p9)
}
  0x32   :  { %46 = dma.hbm_to_vmem [thread:$0]  %s436_s2, 128, %s41_s11, [#allocation7], %s336_s24, %s336_s24, %s337_s25  }
  0x33   :  { %328 = dma.done.wait [#allocation4], 128  }
  0x34   :  { %329 = vsyncadd [#allocation4], 4294967168 }
  0x35   :  { %330 = dma.done.wait [#allocation7], 640  }
  0x36   :  { %331 = vsyncadd [#allocation7], 4294966656  ;;  %vm61_vm0 = vcmask 523264   ;;  %v339_v0 = vmov 0.0   ;;  %vm340_vm1 = vmmov 0   ;;  %v235_v1 = vld [vmem:[#allocation6] sm:$0xff]  }
  0x37   :  { %215 = vmatprep.subr.bf16.mxu0 %v339_v0  ;;  %223 = vmatprep.mubr.msk.bf16.mxu0 %vm340_vm1, %v339_v0  ;;  %62 = vst.msk [vmem:[#allocation2] sm:$0xff] %vm61_vm0, %v339_v0  ;;  %63 = vst.msk [vmem:[#allocation2 + $0x8] sm:$0xff] %vm61_vm0, %v339_v0  ;;  %v236_v2 = vld [vmem:[#allocation6 + $0x8] sm:$0xff]   ;;  %v237_v3 = vld [vmem:[#allocation6 + $0x10] sm:$0xff]   ;;  %vm175_vm2 = vcmask 519168   ;;  %s341_s2 = smov [#allocation9]  }
  0x38   :  { %216 = vmatpush3.bf16.msra.mxu0 %v235_v1  ;;  %v238_v4 = vld [vmem:[#allocation6 + $0x18] sm:$0xff]   ;;  %v207_v14 = vld [vmem:[#allocation8] sm:$0xff]   ;;  %s183_s21 = sshll.u32 %s341_s2, 4  ;;  %s184_s21 = int_to_ptr.vmem [resolvable:$true] %s183_s21 }
  0x39   :  { %217 = vmatprep.subr.bf16.mxu0 %v339_v0  ;;  %v239_v5 = vld [vmem:[#allocation3] sm:$0xff]   ;;  %v208_v15 = vunpack.c.l.bf16 %v207_v14  ;;  %v209_v18 = vunpack.c.h.bf16 %v207_v14  ;;  %s306_s22 = scalar_lea.vmem %s184_s21, 128  ;;  %p311_p11 = scmp.lt.s32.totalorder %s184_s21, %s184_s21 }
  0x3a   :  { %p307_p10 = scmp.ne.s32.totalorder %s184_s21, %s306_s22  ;;  %p312_p12 = scmp.lt.s32.totalorder %s306_s22, %s306_s22 }
  0x3c   :  { %218 = vmatpush3.bf16.msra.mxu0 %v236_v2  ;;  %p313_p13 = por %p312_p12, %p311_p11 }
  0x3d   :  { %219 = vmatprep.subr.bf16.mxu0 %v339_v0 }
  0x3e   :  { %v64_v6 = vld [vmem:[#allocation2] sm:$0xff]  ;;  %v65_v8 = vld [vmem:[#allocation2 + $0x8] sm:$0xff]  ;;  %p314_p0 = pnand %p313_p13, %p307_p10 }
  0x40   :  { %220 = vmatpush3.bf16.msra.mxu0 %v237_v3 }
  0x41   :  { %221 = vmatprep.subr.bf16.mxu0 %v339_v0 }
  0x44   :  { %222 = vmatpush3.bf16.msra.mxu0 %v238_v4 }
  0x47   :  { %224 = vmatmul.mubr.msk.bf16.vlgmr.msra.gmra.mrb[0].mxu0 %vm61_vm0, %v239_v5 }
 0x11a   :  { %v143_v7 = vpop.f32.mrb[0].mxu0 }
 0x11b   :  { %v150_v9 = vadd.f32 %v143_v7, %v64_v6  ;;  %v225_v10 = vpop.f32.mrb[1].mxu0 }
 0x11c   :  { %v146_v11 = vpop.f32.mrb[2].mxu0 }
 0x11d   :  { %152 = vst.msk [vmem:[#allocation2] sm:$0xff] %vm61_vm0, %v150_v9  ;;  %v151_v12 = vadd.f32 %v146_v11, %v65_v8  ;;  %v226_v13 = vpop.f32.mrb[3].mxu0 }
 0x11f   :  { %153 = vst.msk [vmem:[#allocation2 + $0x8] sm:$0xff] %vm61_vm0, %v151_v12 }
 0x124   :  { %v157_v16 = vld [vmem:[#allocation2] sm:$0xff] }
 0x125   :  { %v159_v17 = vmul.f32 0.5, %v157_v16 }
 0x126   :  { %v158_v19 = vld [vmem:[#allocation2 + $0x8] sm:$0xff] }
 0x127   :  { %v160_v20 = vmul.f32 0.5, %v158_v19  ;;  %v165_v21 = vadd.f32 %v208_v15, %v159_v17 }
 0x129   :  { %v166_v22 = vadd.f32 %v209_v18, %v160_v20  ;;  %v204_v23 = vpack.c.bf16 %v165_v21, %v165_v21 }
 0x12b   :  { %v205_v24 = vpack.c.bf16 %v166_v22, %v166_v22  ;;  %176 = vst.msk [vmem:[#allocation9] sm:$0xf] %vm175_vm2, %v204_v23 }
 0x12d   :  { %177 = vst.msk [vmem:[#allocation9 + $0x4] sm:$0xf] %vm175_vm2, %v205_v24 }
 0x12e   :  { %317 = shalt.err (!%p314_p0)
}
 0x12f   :  { %s318_s27 = scalar_lea.hbm %s437_s3, 128 }
 0x130   :  { %p319_p1 = scmp.ne.s32.totalorder %s437_s3, %s318_s27  ;;  %p322_p2 = scmp.lt.u32.totalorder %s318_s27, %s437_s3 }
 0x132   :  { %p324_p3 = pnand %p322_p2, %p319_p1 }
 0x134   :  { %327 = shalt.err (!%p324_p3)
}
 0x135   :  { %189 = dma.vmem_to_hbm [thread:$0]  %s184_s21, 128, %s437_s3, [#allocation5], %s336_s24, %s336_s24, %s337_s25  }
 0x136   :  { %332 = dma.done.wait [#allocation5], 128  }
 0x137   :  { %333 = vsyncadd [#allocation5], 4294967168 }
 0x138   :  { %193 = vsyncpa [#allocation4], 1 }
 0x139   :  { %194 = vsyncpa [#allocation7], 1 }
 0x13a   :  { %195 = vsyncpa [#allocation5], 1 }

// kernel: granite_headless_forward.14
= control target key start
LH: loop header
LB: loop body
LE: loop exit
PB: predicated region body
PF: predicated region fallthrough
CT: control target
= control target key end

     0   :  { %8 = vsyncpa [#allocation4], 0  ;;  %s607_s0 = inlined_call_operand.hbm [shape: bf16[16,64], index: 0, kind: input, shape index: {}]   ;;  %s608_s1 = inlined_call_operand.hbm [shape: bf16[64,192], index: 1, kind: input, shape index: {}]   ;;  %s609_s2 = inlined_call_operand.hbm [shape: bf16[64,192], index: 2, kind: input, shape index: {}]   ;;  %s610_s3 = inlined_call_operand.hbm [shape: bf16[16,192], index: 3, kind: output, shape index: {}]  }
   0x1   :  { %9 = vsyncpa [#allocation7], 0 }
   0x2   :  { %10 = vsyncpa [#allocation5], 0  ;;  %s516_s12 = smov [#allocation6]   ;;  %s422_s16 = scalar_lea.hbm %s608_s1, 1024 }
   0x3   :  { %s28_s13 = sshll.u32 %s516_s12, 4  ;;  %p423_p0 = scmp.ne.s32.totalorder %s608_s1, %s422_s16  ;;  %s29_s13 = int_to_ptr.vmem [resolvable:$true] %s28_s13 }
   0x4   :  { %p426_p1 = scmp.lt.u32.totalorder %s422_s16, %s608_s1 }
   0x6   :  { %p428_p2 = pnand %p426_p1, %p423_p0 }
   0x8   :  { %431 = shalt.err (!%p428_p2)
}
   0x9   :  { %s432_s21 = scalar_lea.vmem %s29_s13, 1024  ;;  %p437_p4 = scmp.lt.s32.totalorder %s29_s13, %s29_s13 }
   0xa   :  { %p433_p3 = scmp.ne.s32.totalorder %s29_s13, %s432_s21  ;;  %p438_p5 = scmp.lt.s32.totalorder %s432_s21, %s432_s21 }
   0xc   :  { %p439_p6 = por %p438_p5, %p437_p4 }
   0xe   :  { %p440_p7 = pnand %p439_p6, %p433_p3 }
  0x10   :  { %443 = shalt.err (!%p440_p7)
}
  0x11   :  { %s517_s22 = smov 128   ;;  %s518_s23 = smov 8  }
  0x12   :  { %34 = dma.hbm_to_vmem [thread:$0]  %s608_s1, 1024, %s29_s13, [#allocation7], %s517_s22, %s517_s22, %s518_s23  }
  0x13   :  { %s519_s26 = smov [#allocation3]   ;;  %s444_s30 = scalar_lea.hbm %s607_s0, 128 }
  0x14   :  { %s16_s27 = sshll.u32 %s519_s26, 4  ;;  %p445_p8 = scmp.ne.s32.totalorder %s607_s0, %s444_s30  ;;  %s17_s27 = int_to_ptr.vmem [resolvable:$true] %s16_s27 }
  0x15   :  { %p448_p9 = scmp.lt.u32.totalorder %s444_s30, %s607_s0 }
  0x17   :  { %p450_p10 = pnand %p448_p9, %p445_p8 }
  0x19   :  { %453 = shalt.err (!%p450_p10)
}
  0x1a   :  { %s454_s8 = scalar_lea.vmem %s17_s27, 128  ;;  %p459_p12 = scmp.lt.s32.totalorder %s17_s27, %s17_s27 }
  0x1b   :  { %p455_p11 = scmp.ne.s32.totalorder %s17_s27, %s454_s8  ;;  %p460_p13 = scmp.lt.s32.totalorder %s454_s8, %s454_s8 }
  0x1d   :  { %p461_p0 = por %p460_p13, %p459_p12 }
  0x1f   :  { %p462_p1 = pnand %p461_p0, %p455_p11 }
  0x21   :  { %465 = shalt.err (!%p462_p1)
}
  0x22   :  { %s520_s1 = smov 64   ;;  %s521_s9 = smov 4  }
  0x23   :  { %22 = dma.hbm_to_vmem [thread:$0]  %s607_s0, 128, %s17_s27, [#allocation4], %s520_s1, %s520_s1, %s521_s9  }
  0x24   :  { %s522_s12 = smov [#allocation8]   ;;  %s466_s16 = scalar_lea.hbm %s609_s2, 1024 }
  0x25   :  { %s40_s13 = sshll.u32 %s522_s12, 4  ;;  %p467_p2 = scmp.ne.s32.totalorder %s609_s2, %s466_s16  ;;  %s41_s13 = int_to_ptr.vmem [resolvable:$true] %s40_s13 }
  0x26   :  { %p470_p3 = scmp.lt.u32.totalorder %s466_s16, %s609_s2 }
  0x28   :  { %p472_p4 = pnand %p470_p3, %p467_p2 }
  0x2a   :  { %475 = shalt.err (!%p472_p4)
}
  0x2b   :  { %s476_s21 = scalar_lea.vmem %s41_s13, 1024  ;;  %p481_p6 = scmp.lt.s32.totalorder %s41_s13, %s41_s13 }
  0x2c   :  { %p477_p5 = scmp.ne.s32.totalorder %s41_s13, %s476_s21  ;;  %p482_p7 = scmp.lt.s32.totalorder %s476_s21, %s476_s21 }
  0x2e   :  { %p483_p8 = por %p482_p7, %p481_p6 }
  0x30   :  { %p484_p9 = pnand %p483_p8, %p477_p5 }
  0x32   :  { %487 = shalt.err (!%p484_p9)
}
  0x33   :  { %46 = dma.hbm_to_vmem [thread:$0]  %s609_s2, 1024, %s41_s13, [#allocation7], %s517_s22, %s517_s22, %s518_s23  }
  0x34   :  { %510 = dma.done.wait [#allocation4], 128  }
  0x35   :  { %511 = vsyncadd [#allocation4], 4294967168 }
  0x36   :  { %512 = dma.done.wait [#allocation7], 2048  }
  0x37   :  { %513 = vsyncadd [#allocation7], 4294965248  ;;  %v366_v0 = vld [vmem:[#allocation3] sm:$0xff]   ;;  %vm67_vm0 = vcmask 523264   ;;  %v378_v7 = vld [vmem:[#allocation6 + $0x4] ss:$8 sps:$4 sm:$0xff]  }
  0x38   :  { %v367_v1 = vunpack.c.l.bf16 %v366_v0  ;;  %v368_v2 = vunpack.c.h.bf16 %v366_v0  ;;  %v380_v8 = vld [vmem:[#allocation8 + $0x4] ss:$8 sps:$4 sm:$0xff]   ;;  %v382_v9 = vld [vmem:[#allocation6] ss:$8 sps:$4 sm:$0xff]   ;;  %138 = vmatprep.subr.bf16.mxu0 %v378_v7  ;;  %v384_v11 = vld [vmem:[#allocation6 + $0x14] ss:$8 sps:$4 sm:$0xff]  }
  0x39   :  { %v383_v10 = vld [vmem:[#allocation8] ss:$8 sps:$4 sm:$0xff]   ;;  %229 = vmatprep.subr.bf16.mxu1 %v380_v8  ;;  %139 = vmatpush1.bf16.msra.mxu0 %v382_v9  ;;  %v386_v12 = vld [vmem:[#allocation8 + $0x14] ss:$8 sps:$4 sm:$0xff]   ;;  %v388_v13 = vld [vmem:[#allocation6 + $0x10] ss:$8 sps:$4 sm:$0xff]  }
  0x3a   :  { %v65_v3 = vmul.f32 %v367_v1, %v367_v1  ;;  %v66_v4 = vmul.f32 %v368_v2, %v368_v2  ;;  %230 = vmatpush1.bf16.msra.mxu1 %v383_v10  ;;  %v389_v14 = vld [vmem:[#allocation8 + $0x10] ss:$8 sps:$4 sm:$0xff]   ;;  %140 = vmatprep.subr.bf16.mxu0 %v384_v11  ;;  %v390_v15 = vld [vmem:[#allocation6 + $0x24] ss:$8 sps:$4 sm:$0xff]   ;;  %v394_v17 = vld [vmem:[#allocation6 + $0x20] ss:$8 sps:$4 sm:$0xff]  }
  0x3b   :  { %231 = vmatprep.subr.bf16.mxu1 %v386_v12  ;;  %v392_v16 = vld [vmem:[#allocation8 + $0x24] ss:$8 sps:$4 sm:$0xff]   ;;  %v395_v18 = vld [vmem:[#allocation8 + $0x20] ss:$8 sps:$4 sm:$0xff]   ;;  %v396_v19 = vld [vmem:[#allocation6 + $0x34] ss:$8 sps:$4 sm:$0xff]  }
  0x3c   :  { %v68_v5 = vsel %vm67_vm0, %v65_v3, 0.0  ;;  %v71_v6 = vsel %vm67_vm0, %v66_v4, 0.0  ;;  %v398_v20 = vld [vmem:[#allocation8 + $0x34] ss:$8 sps:$4 sm:$0xff]   ;;  %v400_v21 = vld [vmem:[#allocation6 + $0x30] ss:$8 sps:$4 sm:$0xff]  }
  0x3d   :  { %69 = vadd.xlane.f32.xlu0 %v68_v5  ;;  %141 = vmatpush1.bf16.msra.mxu0 %v388_v13  ;;  %v401_v22 = vld [vmem:[#allocation8 + $0x30] ss:$8 sps:$4 sm:$0xff]   ;;  %v523_v23 = vmov 0   ;;  %vm316_vm1 = vcmask 1043456   ;;  %vm317_vm2 = vcmask 523268   ;;  %s524_s2 = smov [#allocation9]  }
  0x3e   :  { %232 = vmatpush1.bf16.msra.mxu1 %v389_v14  ;;  %142 = vmatprep.subr.bf16.mxu0 %v390_v15  ;;  %vm318_vm3 = vmor %vm317_vm2, %vm316_vm1  ;;  %s326_s25 = sshll.u32 %s524_s2, 4  ;;  %s327_s25 = int_to_ptr.vmem [resolvable:$true] %s326_s25 }
  0x3f   :  { %233 = vmatprep.subr.bf16.mxu1 %v392_v16  ;;  %170 = vmatprep.mubr.bf16.mxu0 %v523_v23  ;;  %s488_s26 = scalar_lea.vmem %s327_s25, 256  ;;  %p493_p11 = scmp.lt.s32.totalorder %s327_s25, %s327_s25 }
  0x40   :  { %261 = vmatprep.mubr.bf16.mxu1 %v523_v23  ;;  %p489_p10 = scmp.ne.s32.totalorder %s327_s25, %s488_s26  ;;  %p494_p12 = scmp.lt.s32.totalorder %s488_s26, %s488_s26 }
  0x41   :  { %72 = vadd.xlane.f32.xlu0 %v71_v6  ;;  %143 = vmatpush1.bf16.msra.mxu0 %v394_v17 }
  0x42   :  { %234 = vmatpush1.bf16.msra.mxu1 %v395_v18  ;;  %144 = vmatprep.subr.bf16.mxu0 %v396_v19  ;;  %p495_p13 = por %p494_p12, %p493_p11 }
  0x43   :  { %235 = vmatprep.subr.bf16.mxu1 %v398_v20 }
  0x44   :  { %p496_p0 = pnand %p495_p13, %p489_p10 }
  0x45   :  { %145 = vmatpush1.bf16.msra.mxu0 %v400_v21 }
  0x46   :  { %236 = vmatpush1.bf16.msra.mxu1 %v401_v22 }
  0xca   :  { %v70_v24 = vpop.xlane.xlu0 %69 }
  0xcb   :  { %v75_v25 = vmul.f32 0.015625, %v70_v24 }
  0xcd   :  { %v77_v26 = vadd.f32 1e-05, %v75_v25 }
  0xce   :  { %v73_v27 = vpop.xlane.xlu0 %72 }
  0xcf   :  { %v76_v28 = vmul.f32 0.015625, %v73_v27  ;;  %402 = vrsqrt.f32 %v77_v26 }
  0xd1   :  { %v78_v29 = vadd.f32 1e-05, %v76_v28 }
  0xd3   :  { %404 = vrsqrt.f32 %v78_v29 }
  0xd9   :  { %v403_v30 = vpop.eup %402 }
  0xda   :  { %v81_v32 = vmul.f32 %v403_v30, %v367_v1 }
  0xdd   :  { %v405_v31 = vpop.eup %404 }
  0xde   :  { %v82_v33 = vmul.f32 %v405_v31, %v368_v2 }
  0xe0   :  { %v83_v34 = vpack.c.bf16 %v82_v33, %v81_v32 }
  0xe2   :  { %84 = vst.msk [vmem:[#allocation2] sm:$0xff] %vm67_vm0, %v83_v34 }
  0xe9   :  { %v85_v35 = vld [vmem:[#allocation2] sm:$0xff] }
  0xea   :  { %347 = vmatmul.mubr.msk.bf16.vlgmr.msra.gmra.mrb[0].mxu0 %vm67_vm0, %v85_v35  ;;  %356 = vmatmul.mubr.msk.bf16.vlgmr.msra.gmra.mrb[0].mxu1 %vm67_vm0, %v85_v35 }
 0x1bd   :  { %v172_v36 = vpop.f32.mrb[0].mxu0  ;;  %v263_v37 = vpop.f32.mrb[0].mxu1 }
 0x1be   :  { %v357_v38 = vmul.f32 -1.442695, %v172_v36  ;;  %v174_v39 = vpop.f32.mrb[1].mxu0  ;;  %v265_v40 = vpop.f32.mrb[1].mxu1 }
 0x1bf   :  { %v358_v41 = vmul.f32 -1.442695, %v174_v39  ;;  %v176_v42 = vpop.f32.mrb[2].mxu0  ;;  %v267_v43 = vpop.f32.mrb[2].mxu1 }
 0x1c0   :  { %406 = vpow2.f32 %v357_v38  ;;  %v359_v44 = vmul.f32 -1.442695, %v176_v42  ;;  %v178_v45 = vpop.f32.mrb[3].mxu0  ;;  %v269_v46 = vpop.f32.mrb[3].mxu1 }
 0x1c1   :  { %408 = vpow2.f32 %v358_v41  ;;  %v360_v47 = vmul.f32 -1.442695, %v178_v45 }
 0x1c2   :  { %410 = vpow2.f32 %v359_v44 }
 0x1c3   :  { %412 = vpow2.f32 %v360_v47 }
 0x1ca   :  { %v407_v48 = vpop.eup %406 }
 0x1cb   :  { %v409_v49 = vpop.eup %408  ;;  %v284_v50 = vadd.f32 1.0, %v407_v48 }
 0x1cc   :  { %v411_v51 = vpop.eup %410  ;;  %v285_v52 = vadd.f32 1.0, %v409_v49 }
 0x1cd   :  { %v413_v53 = vpop.eup %412  ;;  %414 = vrcp.f32 %v284_v50  ;;  %v286_v54 = vadd.f32 1.0, %v411_v51 }
 0x1ce   :  { %416 = vrcp.f32 %v285_v52  ;;  %v287_v55 = vadd.f32 1.0, %v413_v53 }
 0x1cf   :  { %418 = vrcp.f32 %v286_v54 }
 0x1d0   :  { %420 = vrcp.f32 %v287_v55 }
 0x1d7   :  { %v415_v56 = vpop.eup %414 }
 0x1d8   :  { %v417_v57 = vpop.eup %416  ;;  %v296_v58 = vmul.f32 %v415_v56, %v172_v36 }
 0x1d9   :  { %v419_v59 = vpop.eup %418  ;;  %v297_v60 = vmul.f32 %v417_v57, %v174_v39 }
 0x1da   :  { %v421_v61 = vpop.eup %420  ;;  %v300_v62 = vmul.f32 %v296_v58, %v263_v37  ;;  %v298_v63 = vmul.f32 %v419_v59, %v176_v42 }
 0x1db   :  { %v301_v0 = vmul.f32 %v297_v60, %v265_v40  ;;  %v299_v1 = vmul.f32 %v421_v61, %v178_v45 }
 0x1dc   :  { %v302_v2 = vmul.f32 %v298_v63, %v267_v43 }
 0x1dd   :  { %v363_v3 = vpack.c.bf16 %v301_v0, %v300_v62  ;;  %v303_v4 = vmul.f32 %v299_v1, %v269_v46 }
 0x1df   :  { %v364_v5 = vpack.c.bf16 %v303_v4, %v302_v2  ;;  %319 = vst.msk [vmem:[#allocation9] sm:$0xff] %vm318_vm3, %v363_v3 }
 0x1e1   :  { %320 = vst.msk [vmem:[#allocation9 + $0x8] sm:$0xff] %vm318_vm3, %v364_v5 }
 0x1e2   :  { %499 = shalt.err (!%p496_p0)
}
 0x1e3   :  { %s500_s29 = scalar_lea.hbm %s610_s3, 256 }
 0x1e4   :  { %p501_p1 = scmp.ne.s32.totalorder %s610_s3, %s500_s29  ;;  %p504_p2 = scmp.lt.u32.totalorder %s500_s29, %s610_s3 }
 0x1e6   :  { %p506_p3 = pnand %p504_p2, %p501_p1 }
 0x1e8   :  { %509 = shalt.err (!%p506_p3)
}
 0x1e9   :  { %332 = dma.vmem_to_hbm [thread:$0]  %s327_s25, 256, %s610_s3, [#allocation5], %s517_s22, %s517_s22, %s518_s23  }
 0x1ea   :  { %514 = dma.done.wait [#allocation5], 256  }
 0x1eb   :  { %515 = vsyncadd [#allocation5], 4294967040 }
 0x1ec   :  { %336 = vsyncpa [#allocation4], 1 }
 0x1ed   :  { %337 = vsyncpa [#allocation7], 1 }
 0x1ee   :  { %338 = vsyncpa [#allocation5], 1 }

// kernel: granite_headless_forward.11
= control target key start
LH: loop header
LB: loop body
LE: loop exit
PB: predicated region body
PF: predicated region fallthrough
CT: control target
= control target key end

     0   :  { %7 = vsyncpa [#allocation4], 0  ;;  %s382_s0 = inlined_call_operand.hbm [shape: bf16[16,64], index: 0, kind: input, shape index: {}]   ;;  %s383_s1 = inlined_call_operand.hbm [shape: bf16[64,192], index: 1, kind: input, shape index: {}]   ;;  %s384_s2 = inlined_call_operand.hbm [shape: bf16[16,192], index: 2, kind: output, shape index: {}]  }
   0x1   :  { %8 = vsyncpa [#allocation7], 0 }
   0x2   :  { %9 = vsyncpa [#allocation5], 0  ;;  %s313_s9 = smov [#allocation3]   ;;  %s241_s13 = scalar_lea.hbm %s382_s0, 128 }
   0x3   :  { %s15_s10 = sshll.u32 %s313_s9, 4  ;;  %p242_p0 = scmp.ne.s32.totalorder %s382_s0, %s241_s13  ;;  %s16_s10 = int_to_ptr.vmem [resolvable:$true] %s15_s10 }
   0x4   :  { %p245_p1 = scmp.lt.u32.totalorder %s241_s13, %s382_s0 }
   0x6   :  { %p247_p2 = pnand %p245_p1, %p242_p0 }
   0x8   :  { %250 = shalt.err (!%p247_p2)
}
   0x9   :  { %s251_s18 = scalar_lea.vmem %s16_s10, 128  ;;  %p256_p4 = scmp.lt.s32.totalorder %s16_s10, %s16_s10 }
   0xa   :  { %p252_p3 = scmp.ne.s32.totalorder %s16_s10, %s251_s18  ;;  %p257_p5 = scmp.lt.s32.totalorder %s251_s18, %s251_s18 }
   0xc   :  { %p258_p6 = por %p257_p5, %p256_p4 }
   0xe   :  { %p259_p7 = pnand %p258_p6, %p252_p3 }
  0x10   :  { %262 = shalt.err (!%p259_p7)
}
  0x11   :  { %s314_s19 = smov 64   ;;  %s315_s20 = smov 4  }
  0x12   :  { %21 = dma.hbm_to_vmem [thread:$0]  %s382_s0, 128, %s16_s10, [#allocation4], %s314_s19, %s314_s19, %s315_s20  }
  0x13   :  { %s316_s23 = smov [#allocation6]   ;;  %s263_s27 = scalar_lea.hbm %s383_s1, 1024 }
  0x14   :  { %s27_s24 = sshll.u32 %s316_s23, 4  ;;  %p264_p8 = scmp.ne.s32.totalorder %s383_s1, %s263_s27  ;;  %s28_s24 = int_to_ptr.vmem [resolvable:$true] %s27_s24 }
  0x15   :  { %p267_p9 = scmp.lt.u32.totalorder %s263_s27, %s383_s1 }
  0x17   :  { %p269_p10 = pnand %p267_p9, %p264_p8 }
  0x19   :  { %272 = shalt.err (!%p269_p10)
}
  0x1a   :  { %s273_s4 = scalar_lea.vmem %s28_s24, 1024  ;;  %p278_p12 = scmp.lt.s32.totalorder %s28_s24, %s28_s24 }
  0x1b   :  { %p274_p11 = scmp.ne.s32.totalorder %s28_s24, %s273_s4  ;;  %p279_p13 = scmp.lt.s32.totalorder %s273_s4, %s273_s4 }
  0x1d   :  { %p280_p0 = por %p279_p13, %p278_p12 }
  0x1f   :  { %p281_p1 = pnand %p280_p0, %p274_p11 }
  0x21   :  { %284 = shalt.err (!%p281_p1)
}
  0x22   :  { %s317_s0 = smov 128   ;;  %s318_s5 = smov 8  }
  0x23   :  { %33 = dma.hbm_to_vmem [thread:$0]  %s383_s1, 1024, %s28_s24, [#allocation7], %s317_s0, %s317_s0, %s318_s5  }
  0x24   :  { %307 = dma.done.wait [#allocation4], 128  }
  0x25   :  { %308 = vsyncadd [#allocation4], 4294967168 }
  0x26   :  { %309 = dma.done.wait [#allocation7], 1024  }
  0x27   :  { %310 = vsyncadd [#allocation7], 4294966272  ;;  %v214_v0 = vld [vmem:[#allocation3] sm:$0xff]   ;;  %vm51_vm0 = vcmask 523264   ;;  %v225_v7 = vld [vmem:[#allocation6 + $0x4] ss:$8 sps:$4 sm:$0xff]  }
  0x28   :  { %v215_v1 = vunpack.c.l.bf16 %v214_v0  ;;  %v216_v2 = vunpack.c.h.bf16 %v214_v0  ;;  %v227_v8 = vld [vmem:[#allocation6] ss:$8 sps:$4 sm:$0xff]   ;;  %122 = vmatprep.subr.bf16.mxu0 %v225_v7  ;;  %v228_v9 = vld [vmem:[#allocation6 + $0x14] ss:$8 sps:$4 sm:$0xff]   ;;  %v230_v10 = vld [vmem:[#allocation6 + $0x10] ss:$8 sps:$4 sm:$0xff]  }
  0x29   :  { %123 = vmatpush1.bf16.msra.mxu0 %v227_v8  ;;  %v231_v11 = vld [vmem:[#allocation6 + $0x24] ss:$8 sps:$4 sm:$0xff]   ;;  %v233_v12 = vld [vmem:[#allocation6 + $0x20] ss:$8 sps:$4 sm:$0xff]   ;;  %v234_v13 = vld [vmem:[#allocation6 + $0x34] ss:$8 sps:$4 sm:$0xff]  }
  0x2a   :  { %v49_v3 = vmul.f32 %v215_v1, %v215_v1  ;;  %v50_v4 = vmul.f32 %v216_v2, %v216_v2  ;;  %124 = vmatprep.subr.bf16.mxu0 %v228_v9  ;;  %v236_v14 = vld [vmem:[#allocation6 + $0x30] ss:$8 sps:$4 sm:$0xff]   ;;  %v319_v15 = vmov 0   ;;  %vm177_vm1 = vcmask 1043456   ;;  %s320_s1 = smov [#allocation8]  }
  0x2b   :  { %154 = vmatprep.mubr.bf16.mxu0 %v319_v15  ;;  %vm178_vm2 = vcmask 523268   ;;  %s187_s8 = sshll.u32 %s320_s1, 4  ;;  %s188_s8 = int_to_ptr.vmem [resolvable:$true] %s187_s8 }
  0x2c   :  { %v52_v5 = vsel %vm51_vm0, %v49_v3, 0.0  ;;  %v55_v6 = vsel %vm51_vm0, %v50_v4, 0.0  ;;  %vm179_vm3 = vmor %vm178_vm2, %vm177_vm1  ;;  %s285_s9 = scalar_lea.vmem %s188_s8, 256  ;;  %p290_p3 = scmp.lt.s32.totalorder %s188_s8, %s188_s8 }
  0x2d   :  { %53 = vadd.xlane.f32.xlu0 %v52_v5  ;;  %125 = vmatpush1.bf16.msra.mxu0 %v230_v10  ;;  %p286_p2 = scmp.ne.s32.totalorder %s188_s8, %s285_s9  ;;  %p291_p4 = scmp.lt.s32.totalorder %s285_s9, %s285_s9 }
  0x2e   :  { %126 = vmatprep.subr.bf16.mxu0 %v231_v11 }
  0x2f   :  { %p292_p5 = por %p291_p4, %p290_p3 }
  0x31   :  { %56 = vadd.xlane.f32.xlu0 %v55_v6  ;;  %127 = vmatpush1.bf16.msra.mxu0 %v233_v12  ;;  %p293_p6 = pnand %p292_p5, %p286_p2 }
  0x32   :  { %128 = vmatprep.subr.bf16.mxu0 %v234_v13 }
  0x35   :  { %129 = vmatpush1.bf16.msra.mxu0 %v236_v14 }
  0xba   :  { %v54_v16 = vpop.xlane.xlu0 %53 }
  0xbb   :  { %v59_v17 = vmul.f32 0.015625, %v54_v16 }
  0xbd   :  { %v61_v18 = vadd.f32 1e-05, %v59_v17 }
  0xbe   :  { %v57_v19 = vpop.xlane.xlu0 %56 }
  0xbf   :  { %v60_v20 = vmul.f32 0.015625, %v57_v19  ;;  %237 = vrsqrt.f32 %v61_v18 }
  0xc1   :  { %v62_v21 = vadd.f32 1e-05, %v60_v20 }
  0xc3   :  { %239 = vrsqrt.f32 %v62_v21 }
  0xc9   :  { %v238_v22 = vpop.eup %237 }
  0xca   :  { %v65_v24 = vmul.f32 %v238_v22, %v215_v1 }
  0xcd   :  { %v240_v23 = vpop.eup %239 }
  0xce   :  { %v66_v25 = vmul.f32 %v240_v23, %v216_v2 }
  0xd0   :  { %v67_v26 = vpack.c.bf16 %v66_v25, %v65_v24 }
  0xd2   :  { %68 = vst.msk [vmem:[#allocation2] sm:$0xff] %vm51_vm0, %v67_v26 }
  0xd9   :  { %v69_v27 = vld [vmem:[#allocation2] sm:$0xff] }
  0xda   :  { %208 = vmatmul.mubr.msk.bf16.vlgmr.msra.gmra.mrb[0].mxu0 %vm51_vm0, %v69_v27 }
 0x1ad   :  { %v156_v28 = vpop.f32.mrb[0].mxu0 }
 0x1ae   :  { %v158_v29 = vpop.f32.mrb[1].mxu0 }
 0x1af   :  { %v211_v30 = vpack.c.bf16 %v158_v29, %v156_v28  ;;  %v160_v31 = vpop.f32.mrb[2].mxu0 }
 0x1b0   :  { %v162_v32 = vpop.f32.mrb[3].mxu0 }
 0x1b1   :  { %v212_v33 = vpack.c.bf16 %v162_v32, %v160_v31  ;;  %180 = vst.msk [vmem:[#allocation8] sm:$0xff] %vm179_vm3, %v211_v30 }
 0x1b3   :  { %181 = vst.msk [vmem:[#allocation8 + $0x8] sm:$0xff] %vm179_vm3, %v212_v33 }
 0x1b4   :  { %296 = shalt.err (!%p293_p6)
}
 0x1b5   :  { %s297_s12 = scalar_lea.hbm %s384_s2, 256 }
 0x1b6   :  { %p298_p7 = scmp.ne.s32.totalorder %s384_s2, %s297_s12  ;;  %p301_p8 = scmp.lt.u32.totalorder %s297_s12, %s384_s2 }
 0x1b8   :  { %p303_p9 = pnand %p301_p8, %p298_p7 }
 0x1ba   :  { %306 = shalt.err (!%p303_p9)
}
 0x1bb   :  { %193 = dma.vmem_to_hbm [thread:$0]  %s188_s8, 256, %s384_s2, [#allocation5], %s317_s0, %s317_s0, %s318_s5  }
 0x1bc   :  { %311 = dma.done.wait [#allocation5], 256  }
 0x1bd   :  { %312 = vsyncadd [#allocation5], 4294967040 }
 0x1be   :  { %197 = vsyncpa [#allocation4], 1 }
 0x1bf   :  { %198 = vsyncpa [#allocation7], 1 }
 0x1c0   :  { %199 = vsyncpa [#allocation5], 1 }

// kernel: granite_headless_forward.12
= control target key start
LH: loop header
LB: loop body
LE: loop exit
PB: predicated region body
PF: predicated region fallthrough
CT: control target
= control target key end

     0   :  { %8 = vsyncpa [#allocation4], 0  ;;  %s1684_s0 = inlined_call_operand.hbm [shape: bf16[2,8,192], index: 0, kind: input, shape index: {}]   ;;  %s1685_s1 = inlined_call_operand.hbm [shape: f32[8,16], index: 1, kind: input, shape index: {}]   ;;  %s1686_s2 = inlined_call_operand.hbm [shape: f32[8,16], index: 2, kind: input, shape index: {}]   ;;  %s1687_s3 = inlined_call_operand.hbm [shape: bf16[2,8,64], index: 3, kind: output, shape index: {}]  }
   0x1   :  { %10 = vsyncpa [#allocation4 + $0x1], 0 }
   0x2   :  { %11 = vsyncpa [#allocation7], 0 }
   0x3   :  { %12 = vsyncpa [#allocation5], 0 }
   0x4   :  { %14 = vsyncpa [#allocation5 + $0x1], 0  ;;  %s1311_s12 = smov 0   ;;  %s1313_s13 = smov 0  }
   0x5   :  { %s1315_s14 = smov 0   ;;  %s1317_s15 = smov 0  }
   0x6 LB: > { %s1332_s16 = sadd.s32 4294967295, %s1268_s15   ;;  %s920_s17 = sadd.s32 4294967294, %s1268_s15   ;;  %s1268_s15 = sphi %s1317_s15, %s1707_s15   ;;  %s1264_s14 = sphi %s1315_s14, %s1706_s14   ;;  %s1260_s13 = sphi %s1313_s13, %s1705_s13   ;;  %s1256_s12 = sphi %s1311_s12, %s1704_s12  }
   0x7   : > { %p40_p0 = scmp.ne.s32.totalorder %s1260_s13, %s1256_s12  ;;  %p1688_p1 = scmp.eq.s32.totalorder %s1332_s16, 0 }
   0x8   : > { %p112_p3 = scmp.eq.s32.totalorder %s920_s17, 1  ;;  %p921_p5 = scmp.ge.s32.totalorder %s1268_s15, 1 }
   0x9   : > { %p1341_p4 = por %p1688_p1, %p40_p0  ;;  %p119_p7 = scmp.lt.s32.totalorder %s1268_s15, 3 }
   0xa   : > { %p1346_p6 = por %p112_p3, %p40_p0  ;;  %s1270_s21 = smov [#allocation6]  }
   0xb   : > { %s1691_s18 = scalar_select %p1341_p4, 1, 0 }
   0xc   : > { %s1692_s19 = scalar_select %p1346_p6, 1, 0 }
   0xd   : > { %p1351_p8 = pnand %p921_p5, %p119_p7  ;;  %s132_s22 = sshll.u32 %s1270_s21, 4  ;;  %s133_s22 = int_to_ptr.vmem [resolvable:$true] %s132_s22 }
   0xe   : > { %s1271_s23 = smov [#allocation8]   ;;  %s1367_s26 = sadd.s32 1, %s1268_s15  }
   0xf   : > { %s1693_s20 = scalar_select %p1351_p8, 1, 0 }
  0x10   : > { %p1023_p10 = pneg %p1351_p8  ;;  %s143_s24 = sshll.u32 %s1271_s23, 4  ;;  %s1364_s24 = int_to_ptr.vmem [resolvable:$true] %s143_s24 }
  0x11   : > { %s24_s27 = ssub.s32 %s1268_s15, %s1367_s26  ;;  %s1112_s30 = scalar_lea.hbm %s1685_s1, 128 }
  0x12   : > { %p1360_p11 = pnand %p1023_p10, %p1688_p1  ;;  %p1113_p12 = scmp.ne.s32.totalorder %s1685_s1, %s1112_s30 }
  0x13   : > { %p1119_p5 = scmp.lt.u32.totalorder %s1112_s30, %s1685_s1 }
  0x14   : > { %p1114_p13 = pneg %p1360_p11 }
  0x16   : > { %p1115_p0 = pnand %p1114_p13, %p1113_p12 }
  0x18   : > { %p1116_p3 = pneg %p1115_p0 }
  0x1a   : > { %p1121_p7 = pnand %p1119_p5, %p1116_p3 }
  0x1c   : > { %1124 = shalt.err (!%p1121_p7)
}
  0x1d   : > { %s1125_s8 = scalar_lea.vmem %s133_s22, 128  ;;  %p1133_p2 = scmp.lt.s32.totalorder %s133_s22, %s133_s22 }
  0x1e   : > { %p1126_p10 = scmp.ne.s32.totalorder %s133_s22, %s1125_s8  ;;  %p1134_p6 = scmp.lt.s32.totalorder %s1125_s8, %s1125_s8 }
  0x20   : > { %p1128_p9 = pnand %p1126_p10, %p1114_p13  ;;  %p1135_p4 = por %p1134_p6, %p1133_p2 }
  0x22   : > { %p1129_p1 = pneg %p1128_p9 }
  0x24   : > { %p1136_p8 = pnand %p1135_p4, %p1129_p1 }
  0x26   : > { %1139 = shalt.err (!%p1136_p8)
}
  0x27   : > { %1026 = dma.hbm_to_vmem [thread:$0]  (!%p1360_p11), %s1685_s1, 128, %s133_s22, [#allocation7]  }
  0x28   : > { %s1140_s21 = scalar_lea.hbm %s1686_s2, 128 }
  0x29   : > { %p1141_p9 = scmp.ne.s32.totalorder %s1686_s2, %s1140_s21  ;;  %p1147_p4 = scmp.lt.u32.totalorder %s1140_s21, %s1686_s2 }
  0x2b   : > { %p1143_p2 = pnand %p1141_p9, %p1114_p13 }
  0x2d   : > { %p1144_p1 = pneg %p1143_p2 }
  0x2f   : > { %p1149_p6 = pnand %p1147_p4, %p1144_p1 }
  0x31   : > { %1152 = shalt.err (!%p1149_p6)
}
  0x32   : > { %s1153_s22 = scalar_lea.vmem %s1364_s24, 128  ;;  %p1161_p3 = scmp.lt.s32.totalorder %s1364_s24, %s1364_s24 }
  0x33   : > { %p1154_p8 = scmp.ne.s32.totalorder %s1364_s24, %s1153_s22  ;;  %p1162_p5 = scmp.lt.s32.totalorder %s1153_s22, %s1153_s22 }
  0x35   : > { %p1156_p12 = pnand %p1154_p8, %p1114_p13  ;;  %p1163_p7 = por %p1162_p5, %p1161_p3 }
  0x37   : > { %p1157_p0 = pneg %p1156_p12 }
  0x39   : > { %p1164_p10 = pnand %p1163_p7, %p1157_p0 }
  0x3b   : > { %1167 = shalt.err (!%p1164_p10)
}
  0x3c   : > { %1029 = dma.hbm_to_vmem [thread:$0]  (!%p1360_p11), %s1686_s2, 128, %s1364_s24, [#allocation7]  }
  0x3d   : > { %p25_p13 = scmp.eq.s32.totalorder %s24_s27, 0  ;;  %s27_s6 = sadd.s32 1, %s1264_s14 }
  0x3e   : > { %p34_p9 = scmp.ne.s32.totalorder %s1264_s14, %s1260_s13  ;;  %p35_p2 = scmp.eq.s32.totalorder %s1268_s15, 0 }
  0x3f   : > { %s1426_s25 = scalar_select %p25_p13, %s1264_s14, %s27_s6  }
  0x40   : > { %p36_p1 = por %p35_p2, %p34_p9  ;;  %p1695_p4 = scmp.eq.s32.totalorder %s1332_s16, 1 }
  0x41   : > { %p1040_p8 = scmp.lt.s32.totalorder %s1268_s15, 2  ;;  %s154_s8 = sand.u32 1, %s1264_s14  }
  0x42   : > { %p1430_p6 = por %p1695_p4, %p34_p9  ;;  %s925_s9 = sshll.u32 %s154_s8, 3 }
  0x43   : > { %s946_s10 = sshll.u32 %s1268_s15, 7  ;;  %s158_s27 = scalar_lea.vmem [#allocation3], %s925_s9 }
  0x44   : > { %s1440_s24 = scalar_lea.hbm %s1684_s0, %s946_s10  ;;  %s166_s21 = sshll.u32 %s158_s27, 4  ;;  %s1442_s21 = int_to_ptr.vmem [resolvable:$true] %s166_s21 }
  0x45   : > { %p1444_p11 = pnand %p1040_p8, %p36_p1  ;;  %s155_s28 = scalar_lea.sflag [#allocation4], %s154_s8 }
  0x46   : > { %s1168_s29 = scalar_lea.hbm %s1440_s24, 128  ;;  %s1173_s4 = scalar_lea.hbm %s1684_s0, 256 }
  0x47   : > { %p1169_p12 = scmp.ne.s32.totalorder %s1440_s24, %s1168_s29  ;;  %p1170_p0 = pneg %p1444_p11 }
  0x48   : > { %p1174_p7 = scmp.lt.u32.totalorder %s1440_s24, %s1684_s0  ;;  %p1175_p10 = scmp.lt.u32.totalorder %s1173_s4, %s1168_s29 }
  0x49   : > { %p1171_p3 = pnand %p1170_p0, %p1169_p12  ;;  %p1177_p9 = scmp.lt.u32.totalorder %s1168_s29, %s1440_s24 }
  0x4a   : > { %p1176_p13 = por %p1175_p10, %p1174_p7 }
  0x4b   : > { %p1172_p5 = pneg %p1171_p3 }
  0x4c   : > { %p1178_p2 = por %p1177_p9, %p1176_p13 }
  0x4e   : > { %p1179_p1 = pnand %p1178_p2, %p1172_p5 }
  0x50   : > { %1182 = shalt.err (!%p1179_p1)
}
  0x51   : > { %s1183_s8 = scalar_lea.vmem %s1442_s21, 128  ;;  %s1272_s9 = smov [#allocation3]  }
  0x52   : > { %p1184_p4 = scmp.ne.s32.totalorder %s1442_s21, %s1183_s8  ;;  %s1188_s10 = sshll.u32 %s1272_s9, 4  ;;  %s1189_s10 = int_to_ptr.vmem [resolvable:$false] %s1188_s10 }
  0x53   : > { %s1190_s11 = scalar_lea.vmem %s1189_s10, 256  ;;  %p1191_p3 = scmp.lt.s32.totalorder %s1442_s21, %s1189_s10 }
  0x54   : > { %p1186_p8 = pnand %p1184_p4, %p1170_p0  ;;  %p1192_p7 = scmp.lt.s32.totalorder %s1190_s11, %s1183_s8 }
  0x56   : > { %p1187_p12 = pneg %p1186_p8  ;;  %p1193_p10 = por %p1192_p7, %p1191_p3 }
  0x58   : > { %p1194_p13 = pnand %p1193_p10, %p1187_p12 }
  0x5a   : > { %1197 = shalt.err (!%p1194_p13)
}
  0x5b   : > { %1033 = dma.hbm_to_vmem [thread:$0]  (!%p1444_p11), %s1440_s24, 128, %s1442_s21, %s155_s28  }
  0x5c   : > { %p1698_p5 = scmp.ne.s32.totalorder %s1693_s20, 0 }
  0x5d   : > { %s1476_s17 = sand.u32 (!%p1698_p5), 1, %s1260_s13   ;;  %p1699_p0 = scmp.ne.s32.totalorder (!%p1698_p5), %s1691_s18, 0 }
  0x5e   : > { %175 = sbr.rel (%p1698_p5) target bundleno = 1595 (0x63b), region = 32  ;;  %s929_s27 = sshll.u32 (!%p1698_p5), %s1476_s17, 3 }
  0x5f   : > { %s178_s29 = scalar_lea.sflag (!%p1698_p5), [#allocation4], %s1476_s17  ;;  %s181_s30 = scalar_lea.vmem (!%p1698_p5), [#allocation3], %s929_s27 }
  0x65   : > { %1243 = dma.done.wait (%p1699_p0), %s178_s29, 128  }
  0x66   : > { %1245 = vsyncadd (%p1699_p0), %s178_s29, 4294967168  ;;  %p1700_p9 = scmp.eq.s32.totalorder %s1332_s16, 0 }
  0x68   : > { %1247 = dma.done.wait (%p1700_p9), [#allocation7], 256   ;;  %p1701_p11 = pmov %p1700_p9 }
  0x69   : > { %v1488_v0 = vld [vmem:[%s181_s30] sm:$0xff]  ;;  %v214_v1 = vld [vmem:[#allocation6] sm:$0xff]  ;;  %s1273_s20 = smov 64   ;;  %s1274_s24 = smov 56   ;;  %vm229_vm0 = vcmask 64512   ;;  %v1497_v4 = vld [vmem:[#allocation8] sm:$0xff] }
  0x6a   : > { %1249 = vsyncadd (%p1701_p11), [#allocation7], 4294967040  ;;  %v1491_v2 = vunpack.c.l.bf16 %v1488_v0  ;;  %232 = vrot.lane.b32.xlu1 %v214_v1, %s1273_s20  ;;  %s1275_s18 = smov 72   ;;  %s1276_s21 = smov 120   ;;  %v1281_v8 = vmov 0.0   ;;  %vm1283_vm1 = vmmov 0  }
  0x6b   : > { %s1277_s23 = smov 8   ;;  %s1278_s28 = smov 40   ;;  %963 = vmatprep.subr.bf16.mxu0 %v1281_v8  ;;  %969 = vmatprep.subr.bf16.mxu1 %v1281_v8  ;;  %vm258_vm2 = vcmask 130048   ;;  %vm322_vm4 = vcmask 1043456   ;;  %vm517_vm5 = vcmask 261248   ;;  %vm667_vm6 = vcmask 392448  }
  0x6c   : > { %223 = vrot.lane.b32.xlu0 %v1491_v2, %s1274_s24  ;;  %s1279_s22 = smov 24   ;;  %s1280_s4 = smov 80   ;;  %965 = vmatprep.mubr.msk.bf16.mxu0 %vm1283_vm1, %v1281_v8  ;;  %v250_v20 = vmul.f32 %v1491_v2, %v214_v1  ;;  %vm811_vm7 = vcmask 523648   ;;  %vm815_vm8 = vcmask 519168  }
  0x6d   : > { %s1282_s5 = smov 16   ;;  %971 = vmatprep.mubr.msk.bf16.mxu1 %vm1283_vm1, %v1281_v8  ;;  %s1284_s6 = smov 96  }
  0x6e   : > { %s1285_s8 = smov 32   ;;  %s1286_s9 = smov 104  }
  0x6f   : > { %s1287_s10 = smov 112   ;;  %s1288_s11 = smov 88  }
  0x70   : > { %226 = vrot.lane.b32.xlu0 %v1491_v2, %s1275_s18  ;;  %s1289_s27 = smov 48   ;;  %s932_s29 = sshll.u32 %s1476_s17, 2 }
  0x71   : > { %s943_s30 = sshll.u32 %s1332_s16, 6  ;;  %s1290_s16 = smov [#allocation9]  }
  0x74   : > { %243 = vrot.lane.b32.xlu0 %v1491_v2, %s1276_s21 }
  0xdc   : > { %v233_v9 = vpop.permute.xlu1 %232 }
  0xdd   : > { %v235_v10 = vmul.f32 %v233_v9, %v1491_v2 }
  0xde   : > { %v224_v3 = vpop.permute.xlu0 %223 }
  0xe2   : > { %v1499_v5 = vpop.permute.xlu0 %226 }
  0xe3   : > { %v230_v6 = vsel %vm229_vm0, %v224_v3, %v1499_v5 }
  0xe4   : > { %v236_v7 = vmul.f32 %v230_v6, %v1497_v4 }
  0xe6   : > { %238 = vrot.lane.b32.xlu1 %v236_v7, %s1273_s20  ;;  %v244_v18 = vpop.permute.xlu0 %243 }
  0xea   : > { %246 = vrot.lane.b32.xlu1 %v1491_v2, %s1277_s23  ;;  %s1640_s23 = scalar_lea.hbm %s1687_s3, %s943_s30 }
  0xee   : > { %369 = vrot.lane.b32.xlu1 %v1491_v2, %s1278_s28  ;;  %s818_s28 = scalar_lea.sflag [#allocation5], %s1476_s17 }
  0xf2   : > { %519 = vrot.lane.b32.xlu1 %v1491_v2, %s1279_s22 }
  0xf6   : > { %373 = vrot.lane.b32.xlu1 %v214_v1, %s1280_s4 }
  0xfa   : > { %388 = vrot.lane.b32.xlu1 %v214_v1, %s1282_s5 }
  0xfe   : > { %523 = vrot.lane.b32.xlu1 %v214_v1, %s1284_s6 }
 0x102   : > { %538 = vrot.lane.b32.xlu1 %v214_v1, %s1285_s8 }
 0x106   : > { %670 = vrot.lane.b32.xlu1 %v214_v1, %s1287_s10 }
 0x10a   : > { %682 = vrot.lane.b32.xlu1 %v214_v1, %s1289_s27 }
 0x158   : > { %v239_v11 = vpop.permute.xlu1 %238 }
 0x159   : > { %v241_v12 = vadd.f32 %v239_v11, %v235_v10 }
 0x15b   : > { %v242_v13 = vpack.c.bf16 %v241_v12, %v241_v12  ;;  %v216_v12 = vlaneseq }
 0x15c   : > { %v247_v14 = vpop.permute.xlu1 %246 }
 0x15d   : > { %256 = vrot.lane.b32.xlu0 %v242_v13, %s1273_s20  ;;  %v249_v19 = vsel %vm229_vm0, %v244_v18, %v247_v14  ;;  %v1563_v13 = vshrl.u32 %v216_v12, 7  ;;  %s211_s20 = scalar_lea.vmem [#allocation9], %s932_s29 }
 0x15e   : > { %v251_v21 = vmul.f32 %v249_v19, %v1497_v4  ;;  %s831_s24 = sshll.u32 %s211_s20, 4  ;;  %s1642_s24 = int_to_ptr.vmem [resolvable:$true] %s831_s24 }
 0x15f   : > { %s1198_s22 = scalar_lea.vmem %s1642_s24, 64 }
 0x160   : > { %v370_v15 = vpop.permute.xlu1 %369  ;;  %v252_v22 = vadd.f32 %v251_v21, %v250_v20  ;;  %v934_v20 = vcombine.high %v1488_v0, %v1488_v0  ;;  %p1199_p2 = scmp.ne.s32.totalorder %s1642_s24, %s1198_s22 }
 0x161   : > { %384 = vrot.lane.b32.xlu0 %v1491_v2, %s1286_s9  ;;  %v372_v16 = vsel %vm229_vm0, %v370_v15, %v224_v3 }
 0x162   : > { %v377_v17 = vmul.f32 %v372_v16, %v1497_v4  ;;  %v253_v25 = vmul.f32 0.25, %v252_v22  ;;  %v324_v21 = vsel %vm322_vm4, %v934_v20, 0  ;;  %p1200_p1 = pnand %p1199_p2, %p1430_p6 }
 0x163   : > { %970 = vmatpush3.bf16.msra.mxu1 %v324_v21 }
 0x164   : > { %v520_v26 = vpop.permute.xlu1 %519  ;;  %v254_v31 = vpack.c.bf16 %v253_v25, %v253_v25  ;;  %975 = vmatprep.subr.bf16.mxu1 %v1281_v8  ;;  %p1201_p4 = pneg %p1200_p1 }
 0x165   : > { %534 = vrot.lane.b32.xlu0 %v1491_v2, %s1288_s11  ;;  %v522_v28 = vsel %vm229_vm0, %v520_v26, %v370_v15  ;;  %v669_v36 = vsel %vm229_vm0, %v247_v14, %v520_v26  ;;  %v1565_v14 = vand.u32 127, %v216_v12 }
 0x166   : > { %v527_v32 = vmul.f32 %v522_v28, %v1497_v4  ;;  %v674_v38 = vmul.f32 %v669_v36, %v1497_v4 }
 0x167   : > { %vm220_vm3 = vcmp.le.s32.totalorder %v1565_v14, %v1563_v13 }
 0x168   : > { %v374_v37 = vpop.permute.xlu1 %373 }
 0x169   : > { %379 = vrot.lane.b32.xlu0 %v377_v17, %s1280_s4  ;;  %v376_v39 = vmul.f32 %v374_v37, %v1491_v2 }
 0x16c   : > { %v389_v45 = vpop.permute.xlu1 %388 }
 0x16d   : > { %v391_v47 = vmul.f32 %v389_v45, %v1491_v2 }
 0x170   : > { %v524_v46 = vpop.permute.xlu1 %523 }
 0x171   : > { %v526_v51 = vmul.f32 %v524_v46, %v1491_v2 }
 0x174   : > { %v539_v48 = vpop.permute.xlu1 %538 }
 0x175   : > { %v541_v57 = vmul.f32 %v539_v48, %v1491_v2 }
 0x178   : > { %v671_v54 = vpop.permute.xlu1 %670 }
 0x179   : > { %v673_v61 = vmul.f32 %v671_v54, %v1491_v2 }
 0x17c   : > { %v683_v62 = vpop.permute.xlu1 %682 }
 0x1cf   : > { %v257_v23 = vpop.permute.xlu0 %256 }
 0x1d0   : > { %v263_v24 = vsel %vm258_vm2, %v257_v23, 0 }
 0x1d1   : > { %964 = vmatpush3.bf16.xpose.msra.mxu0 %v263_v24 }
 0x1d2   : > { %981 = vmatprep.subr.bf16.mxu0 %v1281_v8 }
 0x1d3   : > { %v385_v27 = vpop.permute.xlu0 %384 }
 0x1d4   : > { %v387_v29 = vsel %vm229_vm0, %v385_v27, %v244_v18 }
 0x1d5   : > { %v392_v30 = vmul.f32 %v387_v29, %v1497_v4 }
 0x1d7   : > { %394 = vrot.lane.b32.xlu0 %v392_v30, %s1282_s5  ;;  %v535_v33 = vpop.permute.xlu0 %534 }
 0x1d8   : > { %v537_v34 = vsel %vm229_vm0, %v535_v33, %v385_v27  ;;  %966 = vmatmul.mubr.msk.bf16.vlgmr.msra.gmra.mrb[0].mxu0 %vm258_vm2, %v254_v31  ;;  %v681_v40 = vsel %vm229_vm0, %v1499_v5, %v535_v33  ;;  %v685_v5 = vmul.f32 %v683_v62, %v1491_v2 }
 0x1d9   : > { %983 = vmatprep.mubr.msk.bf16.mxu0 %vm1283_vm1, %v1281_v8  ;;  %v542_v35 = vmul.f32 %v537_v34, %v1497_v4  ;;  %v686_v42 = vmul.f32 %v681_v40, %v1497_v4 }
 0x1db   : > { %529 = vrot.lane.b32.xlu0 %v527_v32, %s1284_s6  ;;  %v380_v41 = vpop.permute.xlu0 %379 }
 0x1dc   : > { %v382_v43 = vadd.f32 %v380_v41, %v376_v39 }
 0x1de   : > { %v383_v44 = vpack.c.bf16 %v382_v43, %v382_v43 }
 0x1df   : > { %544 = vrot.lane.b32.xlu0 %v542_v35, %s1285_s8 }
 0x1e3   : > { %676 = vrot.lane.b32.xlu0 %v674_v38, %s1287_s10 }
 0x1e7   : > { %688 = vrot.lane.b32.xlu0 %v686_v42, %s1289_s27 }
 0x1eb   : > { %404 = vrot.lane.b32.xlu0 %v383_v44, %s1289_s27 }
 0x249   : > { %v395_v49 = vpop.permute.xlu0 %394 }
 0x24a   : > { %v397_v50 = vadd.f32 %v395_v49, %v391_v47 }
 0x24c   : > { %v398_v52 = vmul.f32 0.25, %v397_v50 }
 0x24d   : > { %v530_v53 = vpop.permute.xlu0 %529 }
 0x24e   : > { %v399_v55 = vpack.c.bf16 %v398_v52, %v398_v52  ;;  %v532_v56 = vadd.f32 %v530_v53, %v526_v51 }
 0x250   : > { %v533_v58 = vpack.c.bf16 %v532_v56, %v532_v56  ;;  %401 = vrot.lane.b32.xlu0 %v399_v55, %s1287_s10 }
 0x251   : > { %v545_v59 = vpop.permute.xlu0 %544 }
 0x252   : > { %v547_v60 = vadd.f32 %v545_v59, %v541_v57 }
 0x254   : > { %v548_v63 = vmul.f32 0.25, %v547_v60  ;;  %554 = vrot.lane.b32.xlu0 %v533_v58, %s1285_s8 }
 0x255   : > { %v677_v1 = vpop.permute.xlu0 %676 }
 0x256   : > { %v549_v3 = vpack.c.bf16 %v548_v63, %v548_v63  ;;  %v679_v4 = vadd.f32 %v677_v1, %v673_v61 }
 0x258   : > { %551 = vrot.lane.b32.xlu0 %v549_v3, %s1284_s6  ;;  %v680_v7 = vpack.c.bf16 %v679_v4, %v679_v4 }
 0x259   : > { %v689_v6 = vpop.permute.xlu0 %688 }
 0x25a   : > { %v691_v9 = vadd.f32 %v689_v6, %v685_v5 }
 0x25c   : > { %v692_v10 = vmul.f32 0.25, %v691_v9  ;;  %698 = vrot.lane.b32.xlu0 %v680_v7, %s1282_s5 }
 0x25d   : > { %v405_v25 = vpop.permute.xlu0 %404 }
 0x25e   : > { %v693_v11 = vpack.c.bf16 %v692_v10, %v692_v10  ;;  %v410_v0 = vsel %vm258_vm2, %v405_v25, 0 }
 0x260   : > { %695 = vrot.lane.b32.xlu0 %v693_v11, %s1280_s4 }
 0x2ab   : > { %v299_v2 = vpop.f32.mrb[0].mxu0 }
 0x2ac   : > { %v305_v15 = vsel %vm220_vm3, %v299_v2, -1e+30  ;;  %v967_v16 = vpop.f32.mrb[1].mxu0 }
 0x2ad   : > { %v302_v17 = vpop.f32.mrb[2].mxu0  ;;  %v306_v18 = vsel %vm229_vm0, %v305_v15, -inf }
 0x2ae   : > { %307 = vmax.xlane.f32.xlu1 %v306_v18  ;;  %v968_v19 = vpop.f32.mrb[3].mxu0 }
 0x2bf   : > { %463 = vrot.lane.b32.xlu1 %v934_v20, %s1287_s10 }
 0x2c2   : > { %v402_v26 = vpop.permute.xlu0 %401 }
 0x2c6   : > { %v555_v29 = vpop.permute.xlu0 %554 }
 0x2c7   : > { %v560_v31 = vsel %vm258_vm2, %v555_v29, 0 }
 0x2ca   : > { %v552_v30 = vpop.permute.xlu0 %551 }
 0x2ce   : > { %v699_v32 = vpop.permute.xlu0 %698 }
 0x2cf   : > { %v704_v33 = vsel %vm258_vm2, %v699_v32, 0 }
 0x2d2   : > { %v696_v34 = vpop.permute.xlu0 %695 }
 0x33b   : > { %v308_v22 = vpop.xlane.xlu1 %307 }
 0x33c   : > { %v309_v23 = vsub.f32 %v305_v15, %v308_v22 }
 0x33e   : > { %v310_v24 = vmul.f32 1.442695, %v309_v23 }
 0x33f   : > { %v464_v35 = vpop.permute.xlu1 %463 }
 0x340   : > { %1096 = vpow2.f32 %v310_v24  ;;  %v469_v36 = vsel %vm322_vm4, %v464_v35, 0 }
 0x341   : > { %982 = vmatpush3.bf16.msra.mxu0 %v469_v36 }
 0x342   : > { %993 = vmatprep.subr.bf16.mxu0 %v1281_v8 }
 0x34a   : > { %v1578_v27 = vpop.eup %1096 }
 0x34b   : > { %v315_v28 = vpack.c.bf16 %v1578_v27, %v1578_v27  ;;  %v312_v19 = vsel %vm229_vm0, %v1578_v27, 0.0 }
 0x34d   : > { %972 = vmatmul.mubr.msk.bf16.vlgmr.msra.gmra.mrb[0].mxu1 %vm229_vm0, %v315_v28 }
 0x34e   : > { %976 = vmatpush3.bf16.xpose.msra.mxu1 %v410_v0  ;;  %977 = vmatprep.mubr.msk.bf16.mxu1 %vm1283_vm1, %v1281_v8 }
 0x34f   : > { %987 = vmatprep.subr.bf16.mxu1 %v1281_v8 }
 0x355   : > { %978 = vmatmul.mubr.msk.bf16.vlgmr.msra.gmra.mrb[4].mxu1 %vm258_vm2, %v402_v26 }
 0x356   : > { %988 = vmatpush3.bf16.xpose.msra.mxu1 %v560_v31  ;;  %989 = vmatprep.mubr.msk.bf16.mxu1 %vm1283_vm1, %v1281_v8 }
 0x357   : > { %999 = vmatprep.subr.bf16.mxu1 %v1281_v8 }
 0x35d   : > { %990 = vmatmul.mubr.msk.bf16.vlgmr.msra.gmra.mrb[8].mxu1 %vm258_vm2, %v552_v30 }
 0x35e   : > { %1000 = vmatpush3.bf16.xpose.msra.mxu1 %v704_v33  ;;  %1001 = vmatprep.mubr.msk.bf16.mxu1 %vm1283_vm1, %v1281_v8 }
 0x365   : > { %1002 = vmatmul.mubr.msk.bf16.vlgmr.msra.gmra.mrb[12].mxu1 %vm258_vm2, %v696_v34 }
 0x420   : > { %v1599_v37 = vpop.f32.mrb[0].mxu1 }
 0x421   : > { %v973_v38 = vpop.f32.mrb[1].mxu1 }
 0x422   : > { %v363_v39 = vpop.f32.mrb[2].mxu1 }
 0x423   : > { %v974_v40 = vpop.f32.mrb[3].mxu1 }
 0x428   : > { %v446_v41 = vpop.f32.mrb[4].mxu1 }
 0x429   : > { %v452_v42 = vsel %vm220_vm3, %v446_v41, -1e+30  ;;  %v979_v43 = vpop.f32.mrb[5].mxu1 }
 0x42a   : > { %v449_v44 = vpop.f32.mrb[6].mxu1  ;;  %v453_v45 = vsel %vm229_vm0, %v452_v42, -inf }
 0x42b   : > { %454 = vmax.xlane.f32.xlu0 %v453_v45  ;;  %v980_v46 = vpop.f32.mrb[7].mxu1 }
 0x430   : > { %v596_v47 = vpop.f32.mrb[8].mxu1 }
 0x431   : > { %v602_v48 = vsel %vm220_vm3, %v596_v47, -1e+30  ;;  %v991_v49 = vpop.f32.mrb[9].mxu1 }
 0x432   : > { %v599_v50 = vpop.f32.mrb[10].mxu1  ;;  %v603_v51 = vsel %vm229_vm0, %v602_v48, -inf }
 0x433   : > { %604 = vmax.xlane.f32.xlu1 %v603_v51  ;;  %v992_v52 = vpop.f32.mrb[11].mxu1 }
 0x438   : > { %v740_v53 = vpop.f32.mrb[12].mxu1 }
 0x439   : > { %v746_v54 = vsel %vm220_vm3, %v740_v53, -1e+30  ;;  %v1003_v55 = vpop.f32.mrb[13].mxu1 }
 0x43a   : > { %v743_v56 = vpop.f32.mrb[14].mxu1  ;;  %v747_v57 = vsel %vm229_vm0, %v746_v54, -inf }
 0x43b   : > { %748 = vmax.xlane.f32.xlu1 %v747_v57  ;;  %v1004_v58 = vpop.f32.mrb[15].mxu1 }
 0x441   : > { %613 = vrot.lane.b32.xlu0 %v934_v20, %s1284_s6 }
 0x44c   : > { %757 = vrot.lane.b32.xlu1 %v934_v20, %s1280_s4  ;;  %s1202_s4 = sshll.u32 %s1290_s16, 4  ;;  %s1203_s4 = int_to_ptr.vmem [resolvable:$false] %s1202_s4 }
 0x44d   : > { %p1205_p8 = scmp.lt.s32.totalorder %s1642_s24, %s1203_s4 }
 0x4b8   : > { %v455_v59 = vpop.xlane.xlu0 %454 }
 0x4b9   : > { %v456_v60 = vsub.f32 %v452_v42, %v455_v59 }
 0x4bb   : > { %v457_v61 = vmul.f32 1.442695, %v456_v60 }
 0x4bc   : > { %v614_v3 = vpop.permute.xlu0 %613 }
 0x4bd   : > { %1098 = vpow2.f32 %v457_v61  ;;  %v619_v6 = vsel %vm322_vm4, %v614_v3, 0 }
 0x4c0   : > { %v605_v62 = vpop.xlane.xlu1 %604 }
 0x4c1   : > { %v606_v63 = vsub.f32 %v602_v48, %v605_v62 }
 0x4c3   : > { %v607_v1 = vmul.f32 1.442695, %v606_v63 }
 0x4c5   : > { %1100 = vpow2.f32 %v607_v1 }
 0x4c7   : > { %v1099_v4 = vpop.eup %1098 }
 0x4c8   : > { %v749_v5 = vpop.xlane.xlu1 %748  ;;  %v459_v7 = vsel %vm229_vm0, %v1099_v4, 0.0  ;;  %v462_v9 = vpack.c.bf16 %v1099_v4, %v1099_v4 }
 0x4c9   : > { %v750_v10 = vsub.f32 %v746_v54, %v749_v5  ;;  %460 = vadd.xlane.f32.xlu1 %v459_v7 }
 0x4ca   : > { %984 = vmatmul.mubr.msk.bf16.vlgmr.msra.gmra.mrb[4].mxu0 %vm229_vm0, %v462_v9 }
 0x4cb   : > { %v751_v11 = vmul.f32 1.442695, %v750_v10  ;;  %994 = vmatpush3.bf16.msra.mxu0 %v619_v6  ;;  %995 = vmatprep.mubr.msk.bf16.mxu0 %vm1283_vm1, %v1281_v8 }
 0x4cc   : > { %1005 = vmatprep.subr.bf16.mxu0 %v1281_v8  ;;  %v758_v12 = vpop.permute.xlu1 %757 }
 0x4cd   : > { %1102 = vpow2.f32 %v751_v11  ;;  %v763_v14 = vsel %vm322_vm4, %v758_v12, 0 }
 0x4cf   : > { %v1101_v13 = vpop.eup %1100 }
 0x4d0   : > { %v609_v2 = vsel %vm229_vm0, %v1101_v13, 0.0  ;;  %v612_v15 = vpack.c.bf16 %v1101_v13, %v1101_v13 }
 0x4d1   : > { %610 = vadd.xlane.f32.xlu0 %v609_v2 }
 0x4d2   : > { %996 = vmatmul.mubr.msk.bf16.vlgmr.msra.gmra.mrb[8].mxu0 %vm229_vm0, %v612_v15 }
 0x4d3   : > { %1006 = vmatpush3.bf16.msra.mxu0 %v763_v14  ;;  %1007 = vmatprep.mubr.msk.bf16.mxu0 %vm1283_vm1, %v1281_v8 }
 0x4d7   : > { %v1103_v16 = vpop.eup %1102 }
 0x4d8   : > { %v753_v17 = vsel %vm229_vm0, %v1103_v16, 0.0  ;;  %v756_v18 = vpack.c.bf16 %v1103_v16, %v1103_v16 }
 0x4d9   : > { %754 = vadd.xlane.f32.xlu1 %v753_v17 }
 0x4da   : > { %1008 = vmatmul.mubr.msk.bf16.vlgmr.msra.gmra.mrb[12].mxu0 %vm229_vm0, %v756_v18 }
 0x4dd   : > { %313 = vadd.xlane.f32.xlu1 %v312_v19 }
 0x556   : > { %v461_v20 = vpop.xlane.xlu1 %460 }
 0x55e   : > { %v611_v8 = vpop.xlane.xlu0 %610 }
 0x566   : > { %v755_v21 = vpop.xlane.xlu1 %754 }
 0x56a   : > { %v314_v22 = vpop.xlane.xlu1 %313 }
 0x56b   : > { %1104 = vrcp.f32 %v314_v22 }
 0x56c   : > { %1106 = vrcp.f32 %v461_v20 }
 0x56d   : > { %1108 = vrcp.f32 %v611_v8 }
 0x56e   : > { %1110 = vrcp.f32 %v755_v21 }
 0x575   : > { %v1105_v23 = vpop.eup %1104 }
 0x576   : > { %v367_v24 = vmul.f32 %v1105_v23, %v1599_v37  ;;  %v1107_v25 = vpop.eup %1106 }
 0x577   : > { %v1109_v27 = vpop.eup %1108 }
 0x578   : > { %368 = vst.msk [vmem:[#allocation2] sm:$0xff] %vm258_vm2, %v367_v24  ;;  %v1111_v36 = vpop.eup %1110 }
 0x59d   : > { %v505_v26 = vpop.f32.mrb[4].mxu0 }
 0x59e   : > { %v512_v28 = vmul.f32 %v1107_v25, %v505_v26  ;;  %v985_v0 = vpop.f32.mrb[5].mxu0 }
 0x59f   : > { %v508_v29 = vpop.f32.mrb[6].mxu0 }
 0x5a0   : > { %v986_v30 = vpop.f32.mrb[7].mxu0  ;;  %514 = vrot.lane.b32.xlu1 %v512_v28, %s1282_s5  ;;  %s1204_s5 = scalar_lea.vmem %s1203_s4, 128 }
 0x5a1   : > { %p1206_p12 = scmp.lt.s32.totalorder %s1204_s5, %s1198_s22 }
 0x5a3   : > { %p1207_p3 = por %p1206_p12, %p1205_p8 }
 0x5a5   : > { %v655_v31 = vpop.f32.mrb[8].mxu0  ;;  %p1208_p7 = pnand %p1207_p3, %p1201_p4 }
 0x5a6   : > { %v662_v32 = vmul.f32 %v1109_v27, %v655_v31  ;;  %v997_v33 = vpop.f32.mrb[9].mxu0 }
 0x5a7   : > { %v658_v34 = vpop.f32.mrb[10].mxu0 }
 0x5a8   : > { %v998_v35 = vpop.f32.mrb[11].mxu0  ;;  %664 = vrot.lane.b32.xlu0 %v662_v32, %s1285_s8 }
 0x5ad   : > { %v799_v37 = vpop.f32.mrb[12].mxu0 }
 0x5ae   : > { %v806_v38 = vmul.f32 %v1111_v36, %v799_v37  ;;  %v1009_v39 = vpop.f32.mrb[13].mxu0 }
 0x5af   : > { %v802_v40 = vpop.f32.mrb[14].mxu0 }
 0x5b0   : > { %808 = vrot.lane.b32.xlu1 %v806_v38, %s1289_s27  ;;  %v1010_v41 = vpop.f32.mrb[15].mxu0 }
 0x612   : > { %v515_v42 = vpop.permute.xlu1 %514 }
 0x613   : > { %518 = vst.msk [vmem:[#allocation2] sm:$0xff] %vm517_vm5, %v515_v42 }
 0x61a   : > { %v665_v43 = vpop.permute.xlu0 %664 }
 0x61b   : > { %668 = vst.msk [vmem:[#allocation2] sm:$0xff] %vm667_vm6, %v665_v43 }
 0x622   : > { %v809_v44 = vpop.permute.xlu1 %808 }
 0x623   : > { %812 = vst.msk [vmem:[#allocation2] sm:$0xff] %vm811_vm7, %v809_v44 }
 0x62a   : > { %v813_v45 = vld [vmem:[#allocation2] sm:$0xff] }
 0x62b   : > { %v814_v46 = vpack.c.bf16 %v813_v45, %v813_v45 }
 0x62d   : > { %816 = vst.msk [vmem:[%s211_s20] sm:$0xf] %vm815_vm8, %v814_v46 }
 0x62e   : > { %1211 = shalt.err (!%p1208_p7)
}
 0x62f   : > { %s1212_s17 = scalar_lea.hbm %s1640_s23, 64  ;;  %s1216_s9 = scalar_lea.hbm %s1687_s3, 128 }
 0x630   : > { %p1213_p10 = scmp.ne.s32.totalorder %s1640_s23, %s1212_s17  ;;  %p1217_p0 = scmp.lt.u32.totalorder %s1640_s23, %s1687_s3 }
 0x631   : > { %p1218_p9 = scmp.lt.u32.totalorder %s1216_s9, %s1212_s17  ;;  %p1220_p2 = scmp.lt.u32.totalorder %s1212_s17, %s1640_s23 }
 0x632   : > { %p1214_p13 = pnand %p1213_p10, %p1430_p6 }
 0x633   : > { %p1219_p11 = por %p1218_p9, %p1217_p0 }
 0x634   : > { %p1215_p5 = pneg %p1214_p13 }
 0x635   : > { %p1221_p1 = por %p1220_p2, %p1219_p11 }
 0x637   : > { %p1222_p4 = pnand %p1221_p1, %p1215_p5 }
 0x639   : > { %1225 = shalt.err (!%p1222_p4)
}
 0x63a   : > { %1021 = dma.vmem_to_hbm [thread:$0]  (%p1430_p6), %s1642_s24, 64, %s1640_s23, %s818_s28  }
 0x63b PF: > { %s843_s27 = sand.u32 1, %s1256_s12   ;;  %p1702_p8 = scmp.ne.s32.totalorder %s1692_s19, 0 }
 0x63c   : > { %p1703_p12 = scmp.ge.s32.totalorder %s1268_s15, 2  ;;  %s844_s29 = scalar_lea.sflag [#allocation5], %s843_s27 }
 0x63e   : > { %p1035_p3 = pnand %p1703_p12, %p1702_p8 }
 0x640   : > { %1251 = dma.done.wait (!%p1035_p3), %s844_s29, 64  }
 0x641   : > { %1253 = vsyncadd (!%p1035_p3), %s844_s29, 4294967232  ;;  %p17_p7 = scmp.ge.s32.totalorder %s1367_s26, 4   ;;  %s1704_s12 = smov %s1260_s13 }
 0x642   : > { %s1705_s13 = smov %s1264_s14  ;;  %s1706_s14 = smov %s1426_s25 }
 0x643   : > { %s1707_s15 = smov %s1367_s26  ;;  %19 = sbr.rel (!%p17_p7) target bundleno = 6 (0x6), region = 85 }
 0x64a   :  { %849 = vsyncpa [#allocation4], 1 }
 0x64b   :  { %851 = vsyncpa [#allocation4 + $0x1], 1 }
 0x64c   :  { %852 = vsyncpa [#allocation7], 1 }
 0x64d   :  { %853 = vsyncpa [#allocation5], 1 }
 0x64e   :  { %855 = vsyncpa [#allocation5 + $0x1], 1 }

// kernel: granite_headless_forward.21
= control target key start
LH: loop header
LB: loop body
LE: loop exit
PB: predicated region body
PF: predicated region fallthrough
CT: control target
= control target key end

     0   :  { %7 = vsyncpa [#allocation3], 0  ;;  %s248_s0 = inlined_call_operand.hbm [shape: bf16[16,64], index: 0, kind: input, shape index: {}]   ;;  %s249_s1 = inlined_call_operand.hbm [shape: f32[1,64], index: 1, kind: input, shape index: {}]   ;;  %s250_s2 = inlined_call_operand.hbm [shape: bf16[16,64], index: 2, kind: output, shape index: {}]  }
   0x1   :  { %8 = vsyncpa [#allocation6], 0 }
   0x2   :  { %9 = vsyncpa [#allocation4], 0  ;;  %s186_s9 = smov [#allocation2]   ;;  %s114_s13 = scalar_lea.hbm %s248_s0, 128 }
   0x3   :  { %s15_s10 = sshll.u32 %s186_s9, 4  ;;  %p115_p0 = scmp.ne.s32.totalorder %s248_s0, %s114_s13  ;;  %s16_s10 = int_to_ptr.vmem [resolvable:$true] %s15_s10 }
   0x4   :  { %p118_p1 = scmp.lt.u32.totalorder %s114_s13, %s248_s0 }
   0x6   :  { %p120_p2 = pnand %p118_p1, %p115_p0 }
   0x8   :  { %123 = shalt.err (!%p120_p2)
}
   0x9   :  { %s124_s18 = scalar_lea.vmem %s16_s10, 128  ;;  %p129_p4 = scmp.lt.s32.totalorder %s16_s10, %s16_s10 }
   0xa   :  { %p125_p3 = scmp.ne.s32.totalorder %s16_s10, %s124_s18  ;;  %p130_p5 = scmp.lt.s32.totalorder %s124_s18, %s124_s18 }
   0xc   :  { %p131_p6 = por %p130_p5, %p129_p4 }
   0xe   :  { %p132_p7 = pnand %p131_p6, %p125_p3 }
  0x10   :  { %135 = shalt.err (!%p132_p7)
}
  0x11   :  { %s187_s19 = smov 64   ;;  %s188_s20 = smov 4  }
  0x12   :  { %21 = dma.hbm_to_vmem [thread:$0]  %s248_s0, 128, %s16_s10, [#allocation3], %s187_s19, %s187_s19, %s188_s20  }
  0x13   :  { %s189_s23 = smov [#allocation5]   ;;  %s136_s27 = scalar_lea.hbm %s249_s1, 16 }
  0x14   :  { %s28_s24 = sshll.u32 %s189_s23, 4  ;;  %p137_p8 = scmp.ne.s32.totalorder %s249_s1, %s136_s27  ;;  %s29_s24 = int_to_ptr.vmem [resolvable:$true] %s28_s24 }
  0x15   :  { %p140_p9 = scmp.lt.u32.totalorder %s136_s27, %s249_s1 }
  0x17   :  { %p142_p10 = pnand %p140_p9, %p137_p8 }
  0x19   :  { %145 = shalt.err (!%p142_p10)
}
  0x1a   :  { %s146_s4 = scalar_lea.vmem %s29_s24, 16  ;;  %s150_s0 = scalar_lea.vmem %s29_s24, 32 }
  0x1b   :  { %p147_p11 = scmp.ne.s32.totalorder %s29_s24, %s146_s4  ;;  %p151_p12 = scmp.lt.s32.totalorder %s29_s24, %s29_s24 }
  0x1c   :  { %p152_p13 = scmp.lt.s32.totalorder %s150_s0, %s146_s4 }
  0x1e   :  { %p153_p0 = por %p152_p13, %p151_p12 }
  0x20   :  { %p154_p1 = pnand %p153_p0, %p147_p11 }
  0x22   :  { %157 = shalt.err (!%p154_p1)
}
  0x23   :  { %31 = dma.hbm_to_vmem [thread:$0]  %s249_s1, 16, %s29_s24, [#allocation6]  }
  0x24   :  { %180 = dma.done.wait [#allocation3], 128  }
  0x25   :  { %181 = vsyncadd [#allocation3], 4294967168 }
  0x26   :  { %182 = dma.done.wait [#allocation6], 16  }
  0x27   :  { %183 = vsyncadd [#allocation6], 4294967280  ;;  %v102_v0 = vld [vmem:[#allocation2] sm:$0xff]   ;;  %vm44_vm0 = vcmask 523264   ;;  %v66_v13 = vlaneseq  ;;  %v61_v14 = vld [vmem:[#allocation5] sm:$0x1] }
  0x28   :  { %v103_v1 = vunpack.c.l.bf16 %v102_v0  ;;  %v104_v2 = vunpack.c.h.bf16 %v102_v0  ;;  %v62_v15 = vpack.c.bf16 %v61_v14, %v61_v14  ;;  %s190_s1 = smov [#allocation7]   ;;  %vm78_vm1 = vcmask 519168  }
  0x29   :  { %v67_v16 = vshrl.u32 %v66_v13, 7  ;;  %s86_s7 = sshll.u32 %s190_s1, 4  ;;  %s87_s7 = int_to_ptr.vmem [resolvable:$true] %s86_s7 }
  0x2a   :  { %v42_v3 = vmul.f32 %v103_v1, %v103_v1  ;;  %v43_v4 = vmul.f32 %v104_v2, %v104_v2  ;;  %v64_v17 = vpack.i.b16 %v62_v15, %v62_v15  ;;  %s158_s8 = scalar_lea.vmem %s87_s7, 128  ;;  %p163_p3 = scmp.lt.s32.totalorder %s87_s7, %s87_s7 }
  0x2b   :  { %v68_v18 = vsub.s32 0, %v67_v16  ;;  %p159_p2 = scmp.ne.s32.totalorder %s87_s7, %s158_s8  ;;  %p164_p4 = scmp.lt.s32.totalorder %s158_s8, %s158_s8 }
  0x2c   :  { %v45_v5 = vsel %vm44_vm0, %v42_v3, 0.0  ;;  %v48_v6 = vsel %vm44_vm0, %v43_v4, 0.0 }
  0x2d   :  { %46 = vadd.xlane.f32.xlu0 %v45_v5  ;;  %v69_v23 = vrot.slane %v64_v17, %v68_v18  ;;  %p165_p5 = por %p164_p4, %p163_p3 }
  0x2f   :  { %p166_p6 = pnand %p165_p5, %p159_p2 }
  0x31   :  { %49 = vadd.xlane.f32.xlu0 %v48_v6 }
  0xba   :  { %v47_v7 = vpop.xlane.xlu0 %46 }
  0xbb   :  { %v52_v8 = vmul.f32 0.015625, %v47_v7 }
  0xbd   :  { %v54_v9 = vadd.f32 1e-05, %v52_v8 }
  0xbe   :  { %v50_v10 = vpop.xlane.xlu0 %49 }
  0xbf   :  { %v53_v11 = vmul.f32 0.015625, %v50_v10  ;;  %110 = vrsqrt.f32 %v54_v9 }
  0xc1   :  { %v55_v12 = vadd.f32 1e-05, %v53_v11 }
  0xc3   :  { %112 = vrsqrt.f32 %v55_v12 }
  0xc9   :  { %v111_v19 = vpop.eup %110 }
  0xca   :  { %v58_v21 = vmul.f32 %v111_v19, %v103_v1 }
  0xcd   :  { %v113_v20 = vpop.eup %112 }
  0xce   :  { %v59_v22 = vmul.f32 %v113_v20, %v104_v2 }
  0xd0   :  { %v60_v24 = vpack.c.bf16 %v59_v22, %v58_v21 }
  0xd2   :  { %v70_v25 = vmul.bf16 %v69_v23, %v60_v24 }
  0xd4   :  { %v99_v26 = vcombine.low %v70_v25, %v70_v25  ;;  %v100_v27 = vcombine.high %v70_v25, %v70_v25 }
  0xd6   :  { %79 = vst.msk [vmem:[#allocation7] sm:$0xf] %vm78_vm1, %v99_v26  ;;  %80 = vst.msk [vmem:[#allocation7 + $0x4] sm:$0xf] %vm78_vm1, %v100_v27 }
  0xd7   :  { %169 = shalt.err (!%p166_p6)
}
  0xd8   :  { %s170_s11 = scalar_lea.hbm %s250_s2, 128 }
  0xd9   :  { %p171_p7 = scmp.ne.s32.totalorder %s250_s2, %s170_s11  ;;  %p174_p8 = scmp.lt.u32.totalorder %s170_s11, %s250_s2 }
  0xdb   :  { %p176_p9 = pnand %p174_p8, %p171_p7 }
  0xdd   :  { %179 = shalt.err (!%p176_p9)
}
  0xde   :  { %92 = dma.vmem_to_hbm [thread:$0]  %s87_s7, 128, %s250_s2, [#allocation4], %s187_s19, %s187_s19, %s188_s20  }
  0xdf   :  { %184 = dma.done.wait [#allocation4], 128  }
  0xe0   :  { %185 = vsyncadd [#allocation4], 4294967168 }
  0xe1   :  { %96 = vsyncpa [#allocation3], 1 }
  0xe2   :  { %97 = vsyncpa [#allocation6], 1 }
  0xe3   :  { %98 = vsyncpa [#allocation4], 1 }

// kernel: granite_headless_forward.15
= control target key start
LH: loop header
LB: loop body
LE: loop exit
PB: predicated region body
PF: predicated region fallthrough
CT: control target
= control target key end

     0   :  { %8 = vsyncpa [#allocation4], 0  ;;  %s498_s0 = inlined_call_operand.hbm [shape: bf16[16,192], index: 0, kind: input, shape index: {}]   ;;  %s499_s1 = inlined_call_operand.hbm [shape: bf16[192,64], index: 1, kind: input, shape index: {}]   ;;  %s500_s2 = inlined_call_operand.hbm [shape: bf16[16,64], index: 2, kind: input, shape index: {}]   ;;  %s501_s3 = inlined_call_operand.hbm [shape: bf16[16,64], index: 3, kind: output, shape index: {}]  }
   0x1   :  { %9 = vsyncpa [#allocation7], 0 }
   0x2   :  { %10 = vsyncpa [#allocation5], 0  ;;  %s406_s12 = smov [#allocation6]   ;;  %s312_s16 = scalar_lea.hbm %s499_s1, 1536 }
   0x3   :  { %s28_s13 = sshll.u32 %s406_s12, 4  ;;  %p313_p0 = scmp.ne.s32.totalorder %s499_s1, %s312_s16  ;;  %s29_s13 = int_to_ptr.vmem [resolvable:$true] %s28_s13 }
   0x4   :  { %p316_p1 = scmp.lt.u32.totalorder %s312_s16, %s499_s1 }
   0x6   :  { %p318_p2 = pnand %p316_p1, %p313_p0 }
   0x8   :  { %321 = shalt.err (!%p318_p2)
}
   0x9   :  { %s322_s21 = scalar_lea.vmem %s29_s13, 1536  ;;  %p327_p4 = scmp.lt.s32.totalorder %s29_s13, %s29_s13 }
   0xa   :  { %p323_p3 = scmp.ne.s32.totalorder %s29_s13, %s322_s21  ;;  %p328_p5 = scmp.lt.s32.totalorder %s322_s21, %s322_s21 }
   0xc   :  { %p329_p6 = por %p328_p5, %p327_p4 }
   0xe   :  { %p330_p7 = pnand %p329_p6, %p323_p3 }
  0x10   :  { %333 = shalt.err (!%p330_p7)
}
  0x11   :  { %s407_s22 = smov 64   ;;  %s408_s23 = smov 4  }
  0x12   :  { %34 = dma.hbm_to_vmem [thread:$0]  %s499_s1, 1536, %s29_s13, [#allocation7], %s407_s22, %s407_s22, %s408_s23  }
  0x13   :  { %s409_s26 = smov [#allocation3]   ;;  %s334_s30 = scalar_lea.hbm %s498_s0, 256 }
  0x14   :  { %s16_s27 = sshll.u32 %s409_s26, 4  ;;  %p335_p8 = scmp.ne.s32.totalorder %s498_s0, %s334_s30  ;;  %s17_s27 = int_to_ptr.vmem [resolvable:$true] %s16_s27 }
  0x15   :  { %p338_p9 = scmp.lt.u32.totalorder %s334_s30, %s498_s0 }
  0x17   :  { %p340_p10 = pnand %p338_p9, %p335_p8 }
  0x19   :  { %343 = shalt.err (!%p340_p10)
}
  0x1a   :  { %s344_s8 = scalar_lea.vmem %s17_s27, 256  ;;  %p349_p12 = scmp.lt.s32.totalorder %s17_s27, %s17_s27 }
  0x1b   :  { %p345_p11 = scmp.ne.s32.totalorder %s17_s27, %s344_s8  ;;  %p350_p13 = scmp.lt.s32.totalorder %s344_s8, %s344_s8 }
  0x1d   :  { %p351_p0 = por %p350_p13, %p349_p12 }
  0x1f   :  { %p352_p1 = pnand %p351_p0, %p345_p11 }
  0x21   :  { %355 = shalt.err (!%p352_p1)
}
  0x22   :  { %s410_s1 = smov 128   ;;  %s411_s9 = smov 8  }
  0x23   :  { %22 = dma.hbm_to_vmem [thread:$0]  %s498_s0, 256, %s17_s27, [#allocation4], %s410_s1, %s410_s1, %s411_s9  }
  0x24   :  { %s412_s12 = smov [#allocation8]   ;;  %s356_s16 = scalar_lea.hbm %s500_s2, 128 }
  0x25   :  { %s40_s13 = sshll.u32 %s412_s12, 4  ;;  %p357_p2 = scmp.ne.s32.totalorder %s500_s2, %s356_s16  ;;  %s41_s13 = int_to_ptr.vmem [resolvable:$true] %s40_s13 }
  0x26   :  { %p360_p3 = scmp.lt.u32.totalorder %s356_s16, %s500_s2 }
  0x28   :  { %p362_p4 = pnand %p360_p3, %p357_p2 }
  0x2a   :  { %365 = shalt.err (!%p362_p4)
}
  0x2b   :  { %s366_s21 = scalar_lea.vmem %s41_s13, 128  ;;  %p371_p6 = scmp.lt.s32.totalorder %s41_s13, %s41_s13 }
  0x2c   :  { %p367_p5 = scmp.ne.s32.totalorder %s41_s13, %s366_s21  ;;  %p372_p7 = scmp.lt.s32.totalorder %s366_s21, %s366_s21 }
  0x2e   :  { %p373_p8 = por %p372_p7, %p371_p6 }
  0x30   :  { %p374_p9 = pnand %p373_p8, %p367_p5 }
  0x32   :  { %377 = shalt.err (!%p374_p9)
}
  0x33   :  { %46 = dma.hbm_to_vmem [thread:$0]  %s500_s2, 128, %s41_s13, [#allocation7], %s407_s22, %s407_s22, %s408_s23  }
  0x34   :  { %400 = dma.done.wait [#allocation4], 256  }
  0x35   :  { %401 = vsyncadd [#allocation4], 4294967040 }
  0x36   :  { %402 = dma.done.wait [#allocation7], 1664  }
  0x37   :  { %403 = vsyncadd [#allocation7], 4294965632  ;;  %vm61_vm0 = vcmask 523264   ;;  %v413_v0 = vmov 0   ;;  %v414_v1 = vmov 0.0   ;;  %v297_v2 = vld [vmem:[#allocation6] sm:$0xff]  }
  0x38   :  { %177 = vmatprep.subr.bf16.mxu0 %v413_v0  ;;  %62 = vst.msk [vmem:[#allocation2] sm:$0xff] %vm61_vm0, %v414_v1  ;;  %63 = vst.msk [vmem:[#allocation2 + $0x8] sm:$0xff] %vm61_vm0, %v414_v1  ;;  %v298_v3 = vld [vmem:[#allocation6 + $0x8] sm:$0xff]   ;;  %v299_v4 = vld [vmem:[#allocation6 + $0x10] sm:$0xff]   ;;  %vm243_vm1 = vcmask 519168   ;;  %s415_s2 = smov [#allocation9]  }
  0x39   :  { %178 = vmatpush1.bf16.msra.mxu0 %v297_v2  ;;  %v300_v5 = vld [vmem:[#allocation6 + $0x18] sm:$0xff]   ;;  %v301_v7 = vld [vmem:[#allocation6 + $0x20] sm:$0xff]   ;;  %v302_v8 = vld [vmem:[#allocation6 + $0x28] sm:$0xff]   ;;  %s251_s25 = sshll.u32 %s415_s2, 4  ;;  %s252_s25 = int_to_ptr.vmem [resolvable:$true] %s251_s25 }
  0x3a   :  { %179 = vmatprep.subr.bf16.mxu0 %v413_v0  ;;  %v311_v6 = vld [vmem:[#allocation3 + $0x4] ss:$8 sps:$4 sm:$0xff]   ;;  %v305_v11 = vld [vmem:[#allocation6 + $0x40] sm:$0xff]   ;;  %v306_v12 = vld [vmem:[#allocation6 + $0x48] sm:$0xff]   ;;  %s378_s26 = scalar_lea.vmem %s252_s25, 128  ;;  %p383_p11 = scmp.lt.s32.totalorder %s252_s25, %s252_s25 }
  0x3b   :  { %278 = vmatprep.mubr.msk.bf16.mxu0 %vm61_vm0, %v311_v6  ;;  %v303_v9 = vld [vmem:[#allocation6 + $0x30] sm:$0xff]   ;;  %v304_v10 = vld [vmem:[#allocation6 + $0x38] sm:$0xff]   ;;  %v284_v24 = vld [vmem:[#allocation8] sm:$0xff]   ;;  %p379_p10 = scmp.ne.s32.totalorder %s252_s25, %s378_s26  ;;  %p384_p12 = scmp.lt.s32.totalorder %s378_s26, %s378_s26 }
  0x3c   :  { %v307_v13 = vld [vmem:[#allocation6 + $0x50] sm:$0xff]   ;;  %v308_v14 = vld [vmem:[#allocation6 + $0x58] sm:$0xff]   ;;  %v285_v25 = vunpack.c.l.bf16 %v284_v24  ;;  %v286_v28 = vunpack.c.h.bf16 %v284_v24 }
  0x3d   :  { %180 = vmatpush1.bf16.msra.mxu0 %v298_v3  ;;  %v309_v15 = vld [vmem:[#allocation3] ss:$8 sps:$4 sm:$0xff]   ;;  %p385_p13 = por %p384_p12, %p383_p11 }
  0x3e   :  { %181 = vmatprep.subr.bf16.mxu0 %v413_v0 }
  0x3f   :  { %v64_v16 = vld [vmem:[#allocation2] sm:$0xff]  ;;  %v65_v18 = vld [vmem:[#allocation2 + $0x8] sm:$0xff]  ;;  %p386_p0 = pnand %p385_p13, %p379_p10 }
  0x41   :  { %182 = vmatpush1.bf16.msra.mxu0 %v299_v4 }
  0x42   :  { %183 = vmatprep.subr.bf16.mxu0 %v413_v0 }
  0x45   :  { %184 = vmatpush1.bf16.msra.mxu0 %v300_v5 }
  0x46   :  { %185 = vmatprep.subr.bf16.mxu0 %v413_v0 }
  0x49   :  { %186 = vmatpush1.bf16.msra.mxu0 %v301_v7 }
  0x4a   :  { %187 = vmatprep.subr.bf16.mxu0 %v413_v0 }
  0x4d   :  { %188 = vmatpush1.bf16.msra.mxu0 %v302_v8 }
  0x4e   :  { %189 = vmatprep.subr.bf16.mxu0 %v413_v0 }
  0x51   :  { %190 = vmatpush1.bf16.msra.mxu0 %v303_v9 }
  0x52   :  { %191 = vmatprep.subr.bf16.mxu0 %v413_v0 }
  0x55   :  { %192 = vmatpush1.bf16.msra.mxu0 %v304_v10 }
  0x56   :  { %193 = vmatprep.subr.bf16.mxu0 %v413_v0 }
  0x59   :  { %194 = vmatpush1.bf16.msra.mxu0 %v305_v11 }
  0x5a   :  { %195 = vmatprep.subr.bf16.mxu0 %v413_v0 }
  0x5d   :  { %196 = vmatpush1.bf16.msra.mxu0 %v306_v12 }
  0x5e   :  { %197 = vmatprep.subr.bf16.mxu0 %v413_v0 }
  0x61   :  { %198 = vmatpush1.bf16.msra.mxu0 %v307_v13 }
  0x62   :  { %199 = vmatprep.subr.bf16.mxu0 %v413_v0 }
  0x65   :  { %200 = vmatpush1.bf16.msra.mxu0 %v308_v14 }
  0x68   :  { %210 = vmatmul.mubr.bf16.vlgmr.msra.gmra.mrb[0].mxu0 %v309_v15 }
 0x13b   :  { %v211_v17 = vpop.f32.mrb[0].mxu0 }
 0x13c   :  { %v218_v19 = vadd.f32 %v211_v17, %v64_v16  ;;  %v213_v20 = vpop.f32.mrb[1].mxu0 }
 0x13d   :  { %v214_v21 = vpop.f32.mrb[2].mxu0 }
 0x13e   :  { %220 = vst.msk [vmem:[#allocation2] sm:$0xff] %vm61_vm0, %v218_v19  ;;  %v219_v22 = vadd.f32 %v214_v21, %v65_v18  ;;  %v216_v23 = vpop.f32.mrb[3].mxu0 }
 0x140   :  { %221 = vst.msk [vmem:[#allocation2 + $0x8] sm:$0xff] %vm61_vm0, %v219_v22 }
 0x145   :  { %v225_v26 = vld [vmem:[#allocation2] sm:$0xff] }
 0x146   :  { %v227_v27 = vmul.f32 0.5, %v225_v26 }
 0x147   :  { %v226_v29 = vld [vmem:[#allocation2 + $0x8] sm:$0xff] }
 0x148   :  { %v228_v30 = vmul.f32 0.5, %v226_v29  ;;  %v233_v31 = vadd.f32 %v285_v25, %v227_v27 }
 0x14a   :  { %v234_v32 = vadd.f32 %v286_v28, %v228_v30  ;;  %v281_v33 = vpack.c.bf16 %v233_v31, %v233_v31 }
 0x14c   :  { %v282_v34 = vpack.c.bf16 %v234_v32, %v234_v32  ;;  %244 = vst.msk [vmem:[#allocation9] sm:$0xf] %vm243_vm1, %v281_v33 }
 0x14e   :  { %245 = vst.msk [vmem:[#allocation9 + $0x4] sm:$0xf] %vm243_vm1, %v282_v34 }
 0x14f   :  { %389 = shalt.err (!%p386_p0)
}
 0x150   :  { %s390_s29 = scalar_lea.hbm %s501_s3, 128 }
 0x151   :  { %p391_p1 = scmp.ne.s32.totalorder %s501_s3, %s390_s29  ;;  %p394_p2 = scmp.lt.u32.totalorder %s390_s29, %s501_s3 }
 0x153   :  { %p396_p3 = pnand %p394_p2, %p391_p1 }
 0x155   :  { %399 = shalt.err (!%p396_p3)
}
 0x156   :  { %257 = dma.vmem_to_hbm [thread:$0]  %s252_s25, 128, %s501_s3, [#allocation5], %s407_s22, %s407_s22, %s408_s23  }
 0x157   :  { %404 = dma.done.wait [#allocation5], 128  }
 0x158   :  { %405 = vsyncadd [#allocation5], 4294967168 }
 0x159   :  { %261 = vsyncpa [#allocation4], 1 }
 0x15a   :  { %262 = vsyncpa [#allocation7], 1 }
 0x15b   :  { %263 = vsyncpa [#allocation5], 1 }

</bundles_post_ra>
